<compile_context>
chip_gen: v6e
topology: v6e:2x2x1
jax: 0.10.0
libtpu: 0.0.40
codegen_flags: <defaults>
</compile_context>

<pallas_src>
import functools

import jax
import jax.numpy as jnp
from jax.experimental import pallas as pl
from jax.experimental.pallas import tpu as pltpu

IN_DIM = 256
G_HID = 512
FUTURE_LEN = 80
TRAJ_DIM = FUTURE_LEN * 4          # 320
S_HID = 64
S_PAD = 128                        # score hidden zero-padded to one lane tile
FUSED_HID = G_HID + S_PAD          # 640 = 5 * 128 (lane aligned)
OUT_PAD = 384                      # 320 traj + 1 score + 63 zero = 3 * 128


def _elu(v):
    # ELU(alpha=1): x if x > 0 else exp(x) - 1.  exp goes to the EUP slot; the
    # min() keeps the discarded branch finite (no inf generated for large x).
    zero = jnp.zeros((), v.dtype)
    return jnp.where(v > 0, v, jnp.exp(jnp.minimum(v, zero)) - 1.0)


def gmm_kernel(x_ref, w1_ref, b1_ref, w2_ref, b2_ref, out_ref, *, act_dtype):
    # x arrives f32 from HBM; cast to bf16 on the VPU (free filler slot).
    x = x_ref[...].astype(jnp.bfloat16)                          # [tm, 256]

    # fused first layer: [gaussian 512 | score 64 | zero-pad 64]
    h = jnp.dot(x, w1_ref[...], preferred_element_type=jnp.float32) + b1_ref[0]
    h = _elu(h.astype(act_dtype))                                # [tm, 640]
    # Dropout(0.1) is a no-op at inference time.

    # fused second layer: traj cols 0..319, score col 320, rest zero columns.
    out = jnp.dot(h.astype(jnp.bfloat16), w2_ref[...],
                  preferred_element_type=jnp.float32) + b2_ref[0]
    out_ref[...] = out.astype(out_ref.dtype)                     # [tm, 384]


def _activation_dtype():
    # bf16 VPU/EUP only exists on v6e / v7x; keep f32 elementwise math elsewhere.
    try:
        kind = jax.devices()[0].device_kind.lower()
    except Exception:
        return jnp.float32
    if ("v6" in kind) or ("v7" in kind) or ("7x" in kind):
        return jnp.bfloat16
    return jnp.float32


def _pick_tm(R):
    if R >= 2048:
        return 512
    if R >= 512:
        return 256
    # tiny/medium R: split rows into ~2 grid steps so v7x's second TensorCore
    # gets work; round up to the 8-sublane granule.
    return max(8, (((R + 1) // 2) + 7) // 8 * 8)


def gmm_predictor(x, packed, *, tm=None):
    B, N, M, D = x.shape
    assert D == IN_DIM
    R = B * N * M
    if tm is None:
        tm = _pick_tm(R)

    xf = x.reshape(R, D)                       # f32; cast happens in-kernel

    full = lambda shape: pl.BlockSpec(shape, lambda i, _s=shape: (0,) * len(_s))

    out = pl.pallas_call(
        functools.partial(gmm_kernel, act_dtype=_activation_dtype()),
        out_shape=jax.ShapeDtypeStruct((R, OUT_PAD), jnp.float32),
        grid_spec=pltpu.PrefetchScalarGridSpec(
            num_scalar_prefetch=0,
            grid=(pl.cdiv(R, tm),),
            in_specs=[
                pl.BlockSpec((tm, IN_DIM), lambda i: (i, 0)),      # row tile of x
                full((IN_DIM, FUSED_HID)), full((1, FUSED_HID)),   # fused layer 1
                full((FUSED_HID, OUT_PAD)), full((1, OUT_PAD)),    # fused layer 2
            ],
            out_specs=pl.BlockSpec((tm, OUT_PAD), lambda i: (i, 0)),
        ),
        compiler_params=pltpu.CompilerParams(
            dimension_semantics=("parallel",)),
    )(xf, packed["w1"], packed["b1"], packed["w2"], packed["b2"])

    traj = out[:, :TRAJ_DIM].reshape(B, N, M, FUTURE_LEN, 4)
    score = out[:, TRAJ_DIM].reshape(B, N, M)
    return traj, score


# -------- parameter packing (PyTorch [out, in] -> fused, lane-padded [in, out]) --------
def pack_params(raw):
    # layer 1: [256, 640] = [g_w1.T | s_w1.T | zeros(64)]
    w1 = jnp.concatenate(
        [raw["g_w1"].T, raw["s_w1"].T,
         jnp.zeros((IN_DIM, S_PAD - S_HID), jnp.float32)], axis=1)
    b1 = jnp.concatenate(
        [raw["g_b1"], raw["s_b1"],
         jnp.zeros((S_PAD - S_HID,), jnp.float32)])[None, :]                # [1, 640]

    # layer 2: [640, 384]; traj -> cols 0..319, score -> col 320, rest zero.
    w2 = jnp.zeros((FUSED_HID, OUT_PAD), jnp.float32)
    w2 = w2.at[:G_HID, :TRAJ_DIM].set(raw["g_w2"].T)                        # [512, 320]
    w2 = w2.at[G_HID:G_HID + S_HID, TRAJ_DIM].set(raw["s_w2"][0])           # col 320
    b2 = jnp.zeros((1, OUT_PAD), jnp.float32)
    b2 = b2.at[0, :TRAJ_DIM].set(raw["g_b2"])
    b2 = b2.at[0, TRAJ_DIM].set(raw["s_b2"][0])

    return {
        "w1": w1.astype(jnp.bfloat16),
        "b1": b1,                                  # f32
        "w2": w2.astype(jnp.bfloat16),
        "b2": b2,                                  # f32
    }


# ---------------- pure-JAX f32 reference of the PyTorch module ----------------
def reference(x, raw):
    elu = lambda v: jnp.where(v > 0, v, jnp.exp(jnp.minimum(v, 0.0)) - 1.0)
    h = elu(x @ raw["g_w1"].T + raw["g_b1"])
    traj = h @ raw["g_w2"].T + raw["g_b2"]
    s = elu(x @ raw["s_w1"].T + raw["s_b1"])
    score = (s @ raw["s_w2"].T + raw["s_b2"])[..., 0]
    B, N, M, _ = x.shape
    return traj.reshape(B, N, M, FUTURE_LEN, 4), score


def init_raw_params(key):
    ks = jax.random.split(key, 8)
    n = lambda k, shape, s=0.02: s * jax.random.normal(k, shape, jnp.float32)
    return {
        "g_w1": n(ks[0], (G_HID, IN_DIM)),   "g_b1": n(ks[1], (G_HID,)),
        "g_w2": n(ks[2], (TRAJ_DIM, G_HID)), "g_b2": n(ks[3], (TRAJ_DIM,)),
        "s_w1": n(ks[4], (S_HID, IN_DIM)),   "s_b1": n(ks[5], (S_HID,)),
        "s_w2": n(ks[6], (1, S_HID)),        "s_b2": n(ks[7], (1,)),
    }


if __name__ == "__main__":
    B, N, M = 2, 3, 6              # modalities = 6, small B/N; feature dim fixed at 256
    key = jax.random.PRNGKey(0)
    k_x, k_p = jax.random.split(key)
    x = jax.random.normal(k_x, (B, N, M, IN_DIM), jnp.float32)
    raw = init_raw_params(k_p)
    packed = pack_params(raw)

    traj, score = gmm_predictor(x, packed)
    traj, score = jax.block_until_ready((traj, score))

    traj_ref, score_ref = reference(x, raw)
    assert traj.shape == (B, N, M, FUTURE_LEN, 4)
    assert score.shape == (B, N, M)
    assert bool(jnp.all(jnp.isfinite(traj))) and bool(jnp.all(jnp.isfinite(score)))
    terr = float(jnp.max(jnp.abs(traj - traj_ref)))
    serr = float(jnp.max(jnp.abs(score - score_ref)))
    # bf16 matmul operands with f32 accumulation vs. f32 reference
    assert terr < 2e-2, terr
    assert serr < 2e-2, serr
    print("KERNEL_OK")
</pallas_src>

<mosaic_0001>
module attributes {stable_mosaic.version = 11 : i64} {
  func.func @gmm_kernel(%arg0: i32, %arg1: memref<24x256xf32, #tpu.memory_space<vmem>>, %arg2: memref<256x640xbf16, #tpu.memory_space<vmem>>, %arg3: memref<1x640xf32, #tpu.memory_space<vmem>>, %arg4: memref<640x384xbf16, #tpu.memory_space<vmem>>, %arg5: memref<1x384xf32, #tpu.memory_space<vmem>>, %arg6: memref<24x384xf32, #tpu.memory_space<vmem>>) attributes {dimension_semantics = [#tpu.dimension_semantics<parallel>], iteration_bounds = array<i64: 2>, scalar_prefetch = 0 : i64, scratch_operands = 0 : i64, tpu.core_type = #tpu.core_type<tc>, window_params = [{transform_indices = @transform_0, window_bounds = array<i64: 24, 256>}, {pipeline_mode = #tpu.pipeline_mode<synchronous>, transform_indices = @transform_1, window_bounds = array<i64: 256, 640>}, {pipeline_mode = #tpu.pipeline_mode<synchronous>, transform_indices = @transform_2, window_bounds = array<i64: 1, 640>}, {pipeline_mode = #tpu.pipeline_mode<synchronous>, transform_indices = @transform_3, window_bounds = array<i64: 640, 384>}, {pipeline_mode = #tpu.pipeline_mode<synchronous>, transform_indices = @transform_4, window_bounds = array<i64: 1, 384>}, {transform_indices = @transform_5, window_bounds = array<i64: 24, 384>}]} {
    %c0 = arith.constant 0 : index
    %c0_0 = arith.constant 0 : index
    %0 = vector.load %arg1[%c0, %c0_0] : memref<24x256xf32, #tpu.memory_space<vmem>>, vector<24x256xf32>
    %1 = arith.truncf %0 : vector<24x256xf32> to vector<24x256xbf16>
    %c0_1 = arith.constant 0 : index
    %c0_2 = arith.constant 0 : index
    %2 = vector.load %arg2[%c0_1, %c0_2] : memref<256x640xbf16, #tpu.memory_space<vmem>>, vector<256x640xbf16>
    %cst = arith.constant dense<0.000000e+00> : vector<24x640xf32>
    %3 = tpu.matmul %1, %2, %cst {dimension_numbers = #tpu.dot_dimension_numbers<[1], [0], [0], [1], [0, 0, 1, 1], [], []>} : vector<24x256xbf16>, vector<256x640xbf16>, vector<24x640xf32> -> vector<24x640xf32>
    %c0_3 = arith.constant 0 : index
    %c0_4 = arith.constant 0 : index
    %4 = vector.load %arg3[%c0_3, %c0_4] : memref<1x640xf32, #tpu.memory_space<vmem>>, vector<1x640xf32>
    %5 = vector.shape_cast %4 : vector<1x640xf32> to vector<640xf32>
    %6 = vector.shape_cast %5 : vector<640xf32> to vector<1x640xf32>
    %7 = vector.broadcast %6 : vector<1x640xf32> to vector<24x640xf32>
    %8 = arith.addf %3, %7 : vector<24x640xf32>
    %cst_5 = arith.constant 0.000000e+00 : f32
    %9 = vector.broadcast %cst_5 : f32 to vector<24x640xf32>
    %10 = arith.cmpf ogt, %8, %9 : vector<24x640xf32>
    %cst_6 = arith.constant 0.000000e+00 : f32
    %11 = vector.broadcast %cst_6 : f32 to vector<24x640xf32>
    %12 = arith.minimumf %8, %11 : vector<24x640xf32>
    %13 = math.exp %12 : vector<24x640xf32>
    %cst_7 = arith.constant 1.000000e+00 : f32
    %14 = vector.broadcast %cst_7 : f32 to vector<24x640xf32>
    %15 = arith.subf %13, %14 : vector<24x640xf32>
    %16 = arith.select %10, %8, %15 : vector<24x640xi1>, vector<24x640xf32>
    %17 = arith.truncf %16 : vector<24x640xf32> to vector<24x640xbf16>
    %c0_8 = arith.constant 0 : index
    %c0_9 = arith.constant 0 : index
    %18 = vector.load %arg4[%c0_8, %c0_9] : memref<640x384xbf16, #tpu.memory_space<vmem>>, vector<640x384xbf16>
    %cst_10 = arith.constant dense<0.000000e+00> : vector<24x384xf32>
    %19 = tpu.matmul %17, %18, %cst_10 {dimension_numbers = #tpu.dot_dimension_numbers<[1], [0], [0], [1], [0, 0, 1, 1], [], []>} : vector<24x640xbf16>, vector<640x384xbf16>, vector<24x384xf32> -> vector<24x384xf32>
    %c0_11 = arith.constant 0 : index
    %c0_12 = arith.constant 0 : index
    %20 = vector.load %arg5[%c0_11, %c0_12] : memref<1x384xf32, #tpu.memory_space<vmem>>, vector<1x384xf32>
    %21 = vector.shape_cast %20 : vector<1x384xf32> to vector<384xf32>
    %22 = vector.shape_cast %21 : vector<384xf32> to vector<1x384xf32>
    %23 = vector.broadcast %22 : vector<1x384xf32> to vector<24x384xf32>
    %24 = arith.addf %19, %23 : vector<24x384xf32>
    %c0_13 = arith.constant 0 : index
    %c0_14 = arith.constant 0 : index
    %25 = vector.load %arg6[%c0_13, %c0_14] : memref<24x384xf32, #tpu.memory_space<vmem>>, vector<24x384xf32>
    tpu.vector_store %arg6[%c0_13, %c0_14], %24 {strides = array<i32>} : memref<24x384xf32, #tpu.memory_space<vmem>>, vector<24x384xf32>,
    return
  }
  func.func @transform_0(%arg0: i32) -> (i32, i32) {
    %c0_i32 = arith.constant 0 : i32
    %c0_i32_0 = arith.constant 0 : i32
    return %arg0, %c0_i32 : i32, i32
  }
  func.func @transform_1(%arg0: i32) -> (i32, i32) {
    %c0_i32 = arith.constant 0 : i32
    %c0_i32_0 = arith.constant 0 : i32
    %c0_i32_1 = arith.constant 0 : i32
    return %c0_i32, %c0_i32_0 : i32, i32
  }
  func.func @transform_2(%arg0: i32) -> (i32, i32) {
    %c0_i32 = arith.constant 0 : i32
    %c0_i32_0 = arith.constant 0 : i32
    %c0_i32_1 = arith.constant 0 : i32
    return %c0_i32, %c0_i32_0 : i32, i32
  }
  func.func @transform_3(%arg0: i32) -> (i32, i32) {
    %c0_i32 = arith.constant 0 : i32
    %c0_i32_0 = arith.constant 0 : i32
    %c0_i32_1 = arith.constant 0 : i32
    return %c0_i32, %c0_i32_0 : i32, i32
  }
  func.func @transform_4(%arg0: i32) -> (i32, i32) {
    %c0_i32 = arith.constant 0 : i32
    %c0_i32_0 = arith.constant 0 : i32
    %c0_i32_1 = arith.constant 0 : i32
    return %c0_i32, %c0_i32_0 : i32, i32
  }
  func.func @transform_5(%arg0: i32) -> (i32, i32) {
    %c0_i32 = arith.constant 0 : i32
    %c0_i32_0 = arith.constant 0 : i32
    return %arg0, %c0_i32 : i32, i32
  }
}

</mosaic_0001>

<bundles_post_ra>
// kernel: tpu_custom_call.1
= control target key start
LH: loop header
LB: loop body
LE: loop exit
PB: predicated region body
PF: predicated region fallthrough
CT: control target
= control target key end

     0   :  { %10 = vsyncpa [#allocation3], 0  ;;  %s3739_s0 = inlined_call_operand.hbm [shape: f32[36,256], index: 0, kind: input, shape index: {}]   ;;  %s3740_s1 = inlined_call_operand.hbm [shape: bf16[256,640], index: 1, kind: input, shape index: {}]   ;;  %s3741_s2 = inlined_call_operand.hbm [shape: f32[1,640], index: 2, kind: input, shape index: {}]   ;;  %s3742_s3 = inlined_call_operand.hbm [shape: bf16[640,384], index: 3, kind: input, shape index: {}]   ;;  %s3743_s4 = inlined_call_operand.vmem [shape: f32[1,384], index: 4, kind: input, shape index: {}]   ;;  %s3744_s5 = inlined_call_operand.hbm [shape: f32[36,384], index: 5, kind: output, shape index: {}]  }
   0x1   :  { %12 = vsyncpa [#allocation3 + $0x1], 0 }
   0x2   :  { %13 = vsyncpa [#allocation6], 0 }
   0x3   :  { %14 = vsyncpa [#allocation9], 0 }
   0x4   :  { %15 = vsyncpa [#allocation4], 0 }
   0x5   :  { %17 = vsyncpa [#allocation4 + $0x1], 0  ;;  %s3317_s18 = smov 0   ;;  %s3319_s19 = smov 0  }
   0x6   :  { %s3321_s20 = smov 0   ;;  %s3323_s21 = smov 0  }
   0x7 LB: > { %s3338_s22 = sadd.s32 4294967295, %s3271_s21   ;;  %s2352_s23 = sadd.s32 4294967294, %s3271_s21   ;;  %s3271_s21 = sphi %s3323_s21, %s3763_s21   ;;  %s3267_s20 = sphi %s3321_s20, %s3762_s20   ;;  %s3263_s19 = sphi %s3319_s19, %s3761_s19   ;;  %s3259_s18 = sphi %s3317_s18, %s3760_s18  }
   0x8   : > { %s3342_s24 = sadd.s32 1, %s3271_s21   ;;  %s30_s25 = sadd.s32 1, %s3267_s20 }
   0x9   : > { %s27_s26 = ssub.s32 %s3271_s21, %s3342_s24  ;;  %p37_p0 = scmp.ne.s32.totalorder %s3267_s20, %s3263_s19 }
   0xa   : > { %p28_p1 = scmp.eq.s32.totalorder %s27_s26, 0  ;;  %p38_p2 = scmp.eq.s32.totalorder %s3271_s21, 0 }
   0xb   : > { %p43_p3 = scmp.ne.s32.totalorder %s3263_s19, %s3259_s18  ;;  %p3745_p4 = scmp.eq.s32.totalorder %s3338_s22, 0 }
   0xc   : > { %s3354_s27 = scalar_select %p28_p1, %s3267_s20, %s30_s25  }
   0xd   : > { %p3356_p5 = por %p38_p2, %p37_p0  ;;  %p3362_p6 = por %p3745_p4, %p43_p3 }
   0xe   : > { %p151_p7 = scmp.eq.s32.totalorder %s3338_s22, 1  ;;  %p157_p8 = scmp.eq.s32.totalorder %s2352_s23, 1 }
   0xf   : > { %p2353_p9 = scmp.ge.s32.totalorder %s3271_s21, 1  ;;  %p164_p10 = scmp.lt.s32.totalorder %s3271_s21, 3 }
  0x10   : > { %p3369_p11 = por %p151_p7, %p37_p0  ;;  %p3373_p12 = por %p157_p8, %p43_p3 }
  0x11   : > { %p3377_p13 = pnand %p2353_p9, %p164_p10  ;;  %s3273_s8 = smov [#allocation5]  }
  0x12   : > { %s3749_s30 = scalar_select %p3369_p11, 1, 0 }
  0x13   : > { %s3750_s6 = scalar_select %p3373_p12, 1, 0 }
  0x14   : > { %p2727_p1 = pneg %p3377_p13  ;;  %s176_s9 = sshll.u32 %s3273_s8, 4  ;;  %s177_s9 = int_to_ptr.vmem [resolvable:$true] %s176_s9 }
  0x15   : > { %s3274_s11 = smov [#allocation7]   ;;  %s3106_s13 = scalar_lea.vmem %s177_s9, 10240 }
  0x16   : > { %p3385_p2 = pnand %p2727_p1, %p3745_p4  ;;  %s190_s12 = sshll.u32 %s3274_s11, 4  ;;  %s191_s12 = int_to_ptr.vmem [resolvable:$true] %s190_s12 }
  0x17   : > { %p3107_p3 = scmp.ne.s32.totalorder %s177_s9, %s3106_s13  ;;  %p3114_p9 = scmp.lt.s32.totalorder %s177_s9, %s177_s9 }
  0x18   : > { %p3097_p0 = pneg %p3385_p2  ;;  %p3115_p10 = scmp.lt.s32.totalorder %s3106_s13, %s3106_s13 }
  0x1a   : > { %p3109_p7 = pnand %p3107_p3, %p3097_p0  ;;  %p3116_p12 = por %p3115_p10, %p3114_p9 }
  0x1c   : > { %p3110_p8 = pneg %p3109_p7 }
  0x1e   : > { %p3117_p1 = pnand %p3116_p12, %p3110_p8 }
  0x20   : > { %3120 = shalt.err (!%p3117_p1)
}
  0x21   : > { %s3275_s14 = smov 320   ;;  %s3276_s15 = smov 20  }
  0x22   : > { %2730 = dma.hbm_to_vmem [thread:$0]  (!%p3385_p2), %s3740_s1, 10240, %s177_s9, [#allocation6], %s3275_s14, %s3275_s14, %s3276_s15  }
  0x23   : > { %s3132_s23 = scalar_lea.vmem %s191_s12, 80  ;;  %s3139_s25 = scalar_lea.vmem %s191_s12, 96 }
  0x24   : > { %p3133_p4 = scmp.ne.s32.totalorder %s191_s12, %s3132_s23  ;;  %p3140_p11 = scmp.lt.s32.totalorder %s191_s12, %s191_s12 }
  0x25   : > { %p3141_p9 = scmp.lt.s32.totalorder %s3139_s25, %s3132_s23 }
  0x26   : > { %p3135_p3 = pnand %p3133_p4, %p3097_p0 }
  0x27   : > { %p3142_p12 = por %p3141_p9, %p3140_p11 }
  0x28   : > { %p3136_p7 = pneg %p3135_p3 }
  0x2a   : > { %p3143_p8 = pnand %p3142_p12, %p3136_p7 }
  0x2c   : > { %3146 = shalt.err (!%p3143_p8)
}
  0x2d   : > { %2733 = dma.hbm_to_vmem [thread:$0]  (!%p3385_p2), %s3741_s2, 80, %s191_s12, [#allocation6]  }
  0x2e   : > { %s3277_s9 = smov [#allocation8]  }
  0x2f   : > { %s200_s11 = sshll.u32 %s3277_s9, 4  ;;  %s201_s11 = int_to_ptr.vmem [resolvable:$true] %s200_s11 }
  0x30   : > { %s3158_s13 = scalar_lea.vmem %s201_s11, 15360  ;;  %p3166_p3 = scmp.lt.s32.totalorder %s201_s11, %s201_s11 }
  0x31   : > { %p3159_p10 = scmp.ne.s32.totalorder %s201_s11, %s3158_s13  ;;  %p3167_p11 = scmp.lt.s32.totalorder %s3158_s13, %s3158_s13 }
  0x33   : > { %p3161_p4 = pnand %p3159_p10, %p3097_p0  ;;  %p3168_p7 = por %p3167_p11, %p3166_p3 }
  0x35   : > { %p3162_p1 = pneg %p3161_p4 }
  0x37   : > { %p3169_p9 = pnand %p3168_p7, %p3162_p1 }
  0x39   : > { %3172 = shalt.err (!%p3169_p9)
}
  0x3a   : > { %s3278_s14 = smov 192   ;;  %s3279_s15 = smov 12  }
  0x3b   : > { %2736 = dma.hbm_to_vmem [thread:$0]  (!%p3385_p2), %s3742_s3, 15360, %s201_s11, [#allocation9], %s3278_s14, %s3278_s14, %s3279_s15  }
  0x3c   : > { %p3746_p12 = scmp.ge.s32.totalorder %s3271_s21, 2 }
  0x3e   : > { %213 = sbr.rel (%p3746_p12) target bundleno = 101 (0x65), region = 32 }
  0x43   : > { %216 = sbr.rel (!%p3356_p5) target bundleno = 101 (0x65), region = 36  ;;  %s217_s17 = sand.u32 (%p3356_p5), 1, %s3267_s20  }
  0x44   : > { %s222_s23 = smul.u32 (%p3356_p5), 3, %s3271_s21  ;;  %s3425_s9 = scalar_lea.sflag (%p3356_p5), [#allocation3], %s217_s17 }
  0x45   : > { %s2709_s25 = smul.u32 (%p3356_p5), 48, %s217_s17 }
  0x46   : > { %s223_s26 = ssub.s32 (%p3356_p5), 5, %s222_s23 }
  0x47   : > { %p224_p0 = scmp.lt.s32.totalorder (%p3356_p5), %s223_s26, 3  ;;  %s221_s11 = scalar_lea.vmem (%p3356_p5), [#allocation2], %s2709_s25 }
  0x49   : > { %s3765_s26 = smov (!%p224_p0, %s223_s26), 3 }
  0x4a   : > { %s3422_s10 = sshll.u32 %s3765_s26, 8 }
  0x4b   : > { %s229_s8 = ssub.s32 768, %s3422_s10 }
  0x4c   : > { %230 = vsyncadd %s3425_s9, %s229_s8  ;;  %p2360_p5 = scmp.ne.s32.totalorder %s3422_s10, 0  ;;  %s2594_s28 = smul.u32 768, %s3271_s21 }
  0x4d   : > { %s236_s13 = sshll.u32 %s221_s11, 4  ;;  %s3177_s25 = scalar_lea.hbm %s3739_s0, 1280  ;;  %s3435_s13 = int_to_ptr.vmem [resolvable:$true] %s236_s13 }
  0x4e   : > { %s3433_s16 = scalar_lea.hbm %s3739_s0, %s2594_s28 }
  0x4f   : > { %s3173_s12 = scalar_lea.hbm %s3433_s16, %s3422_s10  ;;  %p3178_p4 = scmp.lt.s32.totalorder %s3433_s16, %s3739_s0 }
  0x50   : > { %p3174_p2 = scmp.ne.s32.totalorder %s3433_s16, %s3173_s12  ;;  %p3179_p1 = scmp.lt.s32.totalorder %s3177_s25, %s3173_s12 }
  0x52   : > { %p3175_p8 = pnand %p3174_p2, %p2360_p5  ;;  %p3180_p3 = por %p3179_p1, %p3178_p4 }
  0x54   : > { %p3176_p10 = pneg %p3175_p8 }
  0x56   : > { %p3181_p11 = pnand %p3180_p3, %p3176_p10 }
  0x58   : > { %3184 = shalt.err (!%p3181_p11)
}
  0x59   : > { %s3185_s11 = scalar_lea.vmem %s3435_s13, %s3422_s10  ;;  %s3280_s28 = smov [#allocation2]  }
  0x5a   : > { %p3186_p7 = scmp.ne.s32.totalorder %s3435_s13, %s3185_s11  ;;  %s3189_s14 = sshll.u32 %s3280_s28, 4  ;;  %s3190_s14 = int_to_ptr.vmem [resolvable:$false] %s3189_s14 }
  0x5b   : > { %s3191_s15 = scalar_lea.vmem %s3190_s14, 1536  ;;  %p3192_p2 = scmp.lt.s32.totalorder %s3435_s13, %s3190_s14 }
  0x5c   : > { %p3187_p9 = pnand %p3186_p7, %p2360_p5  ;;  %p3193_p8 = scmp.lt.s32.totalorder %s3191_s15, %s3185_s11 }
  0x5e   : > { %p3188_p0 = pneg %p3187_p9  ;;  %p3194_p12 = por %p3193_p8, %p3192_p2 }
  0x60   : > { %p3195_p4 = pnand %p3194_p12, %p3188_p0 }
  0x62   : > { %3198 = shalt.err (!%p3195_p4)
}
  0x63   : > { %s3281_s12 = smov 256   ;;  %s3282_s17 = smov 16  }
  0x64   : > { %242 = dma.hbm_to_vmem [thread:$0]  (%p2360_p5), %s3433_s16, %s3422_s10, %s3435_s13, %s3425_s9, %s3281_s12, %s3281_s12, %s3282_s17  }
  0x65 PF: > { %248 = sbr.rel (%p3377_p13) target bundleno = 706 (0x2c2), region = 40  ;;  %s3464_s23 = sand.u32 (!%p3377_p13), 1, %s3263_s19  }
  0x66   : > { %s2710_s25 = smul.u32 (!%p3377_p13), 48, %s3464_s23  ;;  %s251_s26 = scalar_lea.sflag (!%p3377_p13), [#allocation3], %s3464_s23 }
  0x68   : > { %s3468_s8 = scalar_lea.vmem (!%p3377_p13), [#allocation2], %s2710_s25 }
  0x6a   : > { %3242 = dma.done.wait (%p3362_p6), %s251_s26, 768  }
  0x6b   : > { %3244 = vsyncadd (%p3362_p6), %s251_s26, 4294966528  ;;  %p3753_p12 = scmp.eq.s32.totalorder %s3338_s22, 0 }
  0x6d   : > { %3246 = dma.done.wait (%p3753_p12), [#allocation6], 10320   ;;  %p3754_p13 = pmov %p3753_p12 }
  0x6e   : > { %p3755_p5 = pmov %p3753_p12 }
  0x6f   : > { %3248 = vsyncadd (%p3754_p13), [#allocation6], 4294956976 }
  0x70   : > { %3250 = dma.done.wait (%p3755_p5), [#allocation9], 15360   ;;  %p3756_p10 = pmov %p3755_p5 }
  0x71   : > { %v2793_v0 = vld [vmem:[#allocation5 + $0x11c] ss:$20 sps:$4 sm:$0xff]   ;;  %v2795_v1 = vld [vmem:[#allocation5 + $0x124] ss:$20 sps:$4 sm:$0xff]   ;;  %v2798_v3 = vld [vmem:[#allocation5 + $0x120] ss:$20 sps:$4 sm:$0xff]  }
  0x72   : > { %3252 = vsyncadd (%p3756_p10), [#allocation9], 4294951936  ;;  %855 = vmatprep.subr.bf16.mxu0 %v2793_v0  ;;  %v2797_v2 = vld [vmem:[#allocation5 + $0x118] ss:$20 sps:$4 sm:$0xff]   ;;  %906 = vmatprep.subr.bf16.mxu1 %v2795_v1  ;;  %v2799_v4 = vld [vmem:[#allocation5 + $0xf4] ss:$20 sps:$4 sm:$0xff]  }
  0x73   : > { %856 = vmatpush1.bf16.msra.mxu0 %v2797_v2  ;;  %907 = vmatpush1.bf16.msra.mxu1 %v2798_v3  ;;  %v2801_v5 = vld [vmem:[#allocation5 + $0xfc] ss:$20 sps:$4 sm:$0xff]   ;;  %v2804_v7 = vld [vmem:[#allocation5 + $0xf8] ss:$20 sps:$4 sm:$0xff]   ;;  %v2807_v9 = vld [vmem:[#allocation5 + $0xd4] ss:$20 sps:$4 sm:$0xff]  }
  0x74   : > { %v2803_v6 = vld [vmem:[#allocation5 + $0xf0] ss:$20 sps:$4 sm:$0xff]   ;;  %857 = vmatprep.subr.bf16.mxu0 %v2799_v4  ;;  %908 = vmatprep.subr.bf16.mxu1 %v2801_v5  ;;  %v2805_v8 = vld [vmem:[#allocation5 + $0xcc] ss:$20 sps:$4 sm:$0xff]   ;;  %v2809_v10 = vld [vmem:[#allocation5 + $0xc8] ss:$20 sps:$4 sm:$0xff]  }
  0x75   : > { %v2810_v11 = vld [vmem:[#allocation5 + $0xd0] ss:$20 sps:$4 sm:$0xff]   ;;  %v2813_v13 = vld [vmem:[#allocation5 + $0xac] ss:$20 sps:$4 sm:$0xff]   ;;  %v2816_v15 = vld [vmem:[#allocation5 + $0xa8] ss:$20 sps:$4 sm:$0xff]  }
  0x76   : > { %v2811_v12 = vld [vmem:[#allocation5 + $0xa4] ss:$20 sps:$4 sm:$0xff]   ;;  %v2815_v14 = vld [vmem:[#allocation5 + $0xa0] ss:$20 sps:$4 sm:$0xff]   ;;  %v2817_v16 = vld [vmem:[#allocation5 + $0x7c] ss:$20 sps:$4 sm:$0xff]  }
  0x77   : > { %858 = vmatpush1.bf16.msra.mxu0 %v2803_v6  ;;  %909 = vmatpush1.bf16.msra.mxu1 %v2804_v7  ;;  %v2819_v17 = vld [vmem:[#allocation5 + $0x84] ss:$20 sps:$4 sm:$0xff]   ;;  %v2822_v19 = vld [vmem:[#allocation5 + $0x80] ss:$20 sps:$4 sm:$0xff]   ;;  %v2825_v21 = vld [vmem:[#allocation5 + $0x5c] ss:$20 sps:$4 sm:$0xff]  }
  0x78   : > { %859 = vmatprep.subr.bf16.mxu0 %v2805_v8  ;;  %910 = vmatprep.subr.bf16.mxu1 %v2807_v9  ;;  %v2821_v18 = vld [vmem:[#allocation5 + $0x78] ss:$20 sps:$4 sm:$0xff]   ;;  %v2823_v20 = vld [vmem:[#allocation5 + $0x54] ss:$20 sps:$4 sm:$0xff]   ;;  %v2827_v22 = vld [vmem:[#allocation5 + $0x50] ss:$20 sps:$4 sm:$0xff]  }
  0x79   : > { %v2828_v23 = vld [vmem:[#allocation5 + $0x58] ss:$20 sps:$4 sm:$0xff]   ;;  %v2831_v25 = vld [vmem:[#allocation5 + $0x34] ss:$20 sps:$4 sm:$0xff]   ;;  %v2834_v27 = vld [vmem:[#allocation5 + $0x30] ss:$20 sps:$4 sm:$0xff]  }
  0x7a   : > { %v2829_v24 = vld [vmem:[#allocation5 + $0x2c] ss:$20 sps:$4 sm:$0xff]   ;;  %v2833_v26 = vld [vmem:[#allocation5 + $0x28] ss:$20 sps:$4 sm:$0xff]   ;;  %v2835_v28 = vld [vmem:[#allocation5 + $0x4] ss:$20 sps:$4 sm:$0xff]  }
  0x7b   : > { %860 = vmatpush1.bf16.msra.mxu0 %v2809_v10  ;;  %911 = vmatpush1.bf16.msra.mxu1 %v2810_v11  ;;  %v2837_v29 = vld [vmem:[#allocation5 + $0xc] ss:$20 sps:$4 sm:$0xff]   ;;  %v2840_v31 = vld [vmem:[#allocation5 + $0x8] ss:$20 sps:$4 sm:$0xff]   ;;  %v2843_v33 = vld [vmem:[#allocation5 + $0x264] ss:$20 sps:$4 sm:$0xff]  }
  0x7c   : > { %861 = vmatprep.subr.bf16.mxu0 %v2811_v12  ;;  %912 = vmatprep.subr.bf16.mxu1 %v2813_v13  ;;  %v2839_v30 = vld [vmem:[#allocation5] ss:$20 sps:$4 sm:$0xff]   ;;  %v2841_v32 = vld [vmem:[#allocation5 + $0x25c] ss:$20 sps:$4 sm:$0xff]   ;;  %v2845_v34 = vld [vmem:[#allocation5 + $0x258] ss:$20 sps:$4 sm:$0xff]  }
  0x7d   : > { %v2846_v35 = vld [vmem:[#allocation5 + $0x260] ss:$20 sps:$4 sm:$0xff]   ;;  %v2849_v37 = vld [vmem:[#allocation5 + $0x23c] ss:$20 sps:$4 sm:$0xff]   ;;  %v2852_v39 = vld [vmem:[#allocation5 + $0x238] ss:$20 sps:$4 sm:$0xff]  }
  0x7e   : > { %v2847_v36 = vld [vmem:[#allocation5 + $0x234] ss:$20 sps:$4 sm:$0xff]   ;;  %v2851_v38 = vld [vmem:[#allocation5 + $0x230] ss:$20 sps:$4 sm:$0xff]   ;;  %v2853_v40 = vld [vmem:[#allocation5 + $0x20c] ss:$20 sps:$4 sm:$0xff]  }
  0x7f   : > { %862 = vmatpush1.bf16.msra.mxu0 %v2815_v14  ;;  %913 = vmatpush1.bf16.msra.mxu1 %v2816_v15  ;;  %v2855_v41 = vld [vmem:[#allocation5 + $0x214] ss:$20 sps:$4 sm:$0xff]   ;;  %v2858_v43 = vld [vmem:[#allocation5 + $0x210] ss:$20 sps:$4 sm:$0xff]   ;;  %v2861_v45 = vld [vmem:[#allocation5 + $0x1ec] ss:$20 sps:$4 sm:$0xff]  }
  0x80   : > { %863 = vmatprep.subr.bf16.mxu0 %v2817_v16  ;;  %914 = vmatprep.subr.bf16.mxu1 %v2819_v17  ;;  %v2857_v42 = vld [vmem:[#allocation5 + $0x208] ss:$20 sps:$4 sm:$0xff]   ;;  %v2859_v44 = vld [vmem:[#allocation5 + $0x1e4] ss:$20 sps:$4 sm:$0xff]   ;;  %v2863_v47 = vld [vmem:[#allocation5 + $0x1e0] ss:$20 sps:$4 sm:$0xff]  }
  0x81   : > { %v307_v46 = vld [vmem:[%s3468_s8 + $0x8] sm:$0xff]  ;;  %v309_v49 = vld [vmem:[%s3468_s8 + $0x18] sm:$0xff]  ;;  %v2870_v54 = vld [vmem:[#allocation5 + $0x1c0] ss:$20 sps:$4 sm:$0xff]   ;;  %s2711_s10 = smul.u32 72, %s3464_s23  ;;  %s2229_s13 = scalar_lea.sflag [#allocation4], %s3464_s23 }
  0x82   : > { %v2864_v48 = vld [vmem:[#allocation5 + $0x1e8] ss:$20 sps:$4 sm:$0xff]   ;;  %v3484_v51 = vpack.c.bf16 %v309_v49, %v307_v46  ;;  %v2867_v52 = vld [vmem:[#allocation5 + $0x1c4] ss:$20 sps:$4 sm:$0xff]   ;;  %v2877_v59 = vld [vmem:[#allocation5 + $0x16c] ss:$20 sps:$4 sm:$0xff]  }
  0x83   : > { %864 = vmatpush1.bf16.msra.mxu0 %v2821_v18  ;;  %915 = vmatpush1.bf16.msra.mxu1 %v2822_v19  ;;  %v2865_v50 = vld [vmem:[#allocation5 + $0x1bc] ss:$20 sps:$4 sm:$0xff]   ;;  %v2869_v53 = vld [vmem:[#allocation5 + $0x1b8] ss:$20 sps:$4 sm:$0xff]   ;;  %v2871_v55 = vld [vmem:[#allocation5 + $0x194] ss:$20 sps:$4 sm:$0xff]  }
  0x84   : > { %865 = vmatprep.subr.bf16.mxu0 %v2823_v20  ;;  %916 = vmatprep.subr.bf16.mxu1 %v2825_v21  ;;  %v2873_v56 = vld [vmem:[#allocation5 + $0x19c] ss:$20 sps:$4 sm:$0xff]   ;;  %v2876_v58 = vld [vmem:[#allocation5 + $0x198] ss:$20 sps:$4 sm:$0xff]   ;;  %v2879_v60 = vld [vmem:[#allocation5 + $0x174] ss:$20 sps:$4 sm:$0xff]  }
  0x85   : > { %887 = vmatprep.mubr.bf16.mxu0 %v3484_v51  ;;  %938 = vmatprep.mubr.bf16.mxu1 %v3484_v51  ;;  %v2875_v57 = vld [vmem:[#allocation5 + $0x190] ss:$20 sps:$4 sm:$0xff]   ;;  %v2881_v61 = vld [vmem:[#allocation5 + $0x168] ss:$20 sps:$4 sm:$0xff]   ;;  %v2885_v0 = vld [vmem:[#allocation5 + $0x14c] ss:$20 sps:$4 sm:$0xff]  }
  0x86   : > { %v2882_v62 = vld [vmem:[#allocation5 + $0x170] ss:$20 sps:$4 sm:$0xff]   ;;  %v2887_v1 = vld [vmem:[#allocation5 + $0x140] ss:$20 sps:$4 sm:$0xff]   ;;  %v2888_v2 = vld [vmem:[#allocation5 + $0x148] ss:$20 sps:$4 sm:$0xff]  }
  0x87   : > { %866 = vmatpush1.bf16.msra.mxu0 %v2827_v22  ;;  %917 = vmatpush1.bf16.msra.mxu1 %v2828_v23  ;;  %v2883_v63 = vld [vmem:[#allocation5 + $0x144] ss:$20 sps:$4 sm:$0xff]   ;;  %v2889_v5 = vld [vmem:[#allocation5 + $0x268] ss:$20 sps:$4 sm:$0xff]   ;;  %v2891_v11 = vld [vmem:[#allocation5 + $0x240] ss:$20 sps:$4 sm:$0xff]  }
  0x88   : > { %867 = vmatprep.subr.bf16.mxu0 %v2829_v24  ;;  %918 = vmatprep.subr.bf16.mxu1 %v2831_v25  ;;  %v306_v3 = vld [vmem:[%s3468_s8] sm:$0xff]  ;;  %v308_v4 = vld [vmem:[%s3468_s8 + $0x10] sm:$0xff]  ;;  %v311_v6 = vld [vmem:[%s3468_s8 + $0x28] sm:$0xff]  ;;  %s3664_s9 = scalar_lea.vmem [#allocation10], %s2711_s10  ;;  %p3757_p6 = scmp.ne.s32.totalorder %s3749_s30, 0 }
  0x89   : > { %v3491_v7 = vpack.c.bf16 %v308_v4, %v306_v3  ;;  %v2910_v8 = vld [vmem:[#allocation8 + $0xac] ss:$12 sps:$4 sm:$0xff]   ;;  %v3493_v10 = vpack.c.bf16 %v311_v6, %v311_v6  ;;  %v2908_v12 = vld [vmem:[#allocation8 + $0xa8] ss:$12 sps:$4 sm:$0xff]   ;;  %v2914_v17 = vld [vmem:[#allocation8 + $0x90] ss:$12 sps:$4 sm:$0xff]  }
  0x8a   : > { %v2890_v9 = vld [vmem:[#allocation5 + $0x128] ss:$20 sps:$4 sm:$0xff]   ;;  %v2892_v14 = vld [vmem:[#allocation5 + $0x100] ss:$20 sps:$4 sm:$0xff]   ;;  %v2893_v16 = vld [vmem:[#allocation5 + $0x218] ss:$20 sps:$4 sm:$0xff]  }
  0x8b   : > { %868 = vmatpush1.bf16.msra.mxu0 %v2833_v26  ;;  %919 = vmatpush1.bf16.msra.mxu1 %v2834_v27  ;;  %v2916_v13 = vld [vmem:[#allocation8 + $0x94] ss:$12 sps:$4 sm:$0xff]   ;;  %v2922_v21 = vld [vmem:[#allocation8 + $0x7c] ss:$12 sps:$4 sm:$0xff]   ;;  %v2920_v22 = vld [vmem:[#allocation8 + $0x78] ss:$12 sps:$4 sm:$0xff]  }
  0x8c   : > { %869 = vmatprep.subr.bf16.mxu0 %v2835_v28  ;;  %920 = vmatprep.subr.bf16.mxu1 %v2837_v29  ;;  %v310_v15 = vld [vmem:[%s3468_s8 + $0x20] sm:$0xff]  ;;  %v2894_v19 = vld [vmem:[#allocation5 + $0xd8] ss:$20 sps:$4 sm:$0xff]   ;;  %v2897_v25 = vld [vmem:[#allocation5 + $0x1c8] ss:$20 sps:$4 sm:$0xff]   ;;  %s2236_s16 = smul.u32 (%p3757_p6), 3, %s3338_s22 }
  0x8d   : > { %v3500_v18 = vpack.c.bf16 %v310_v15, %v310_v15  ;;  %v2895_v20 = vld [vmem:[#allocation5 + $0x1f0] ss:$20 sps:$4 sm:$0xff]   ;;  %v2928_v23 = vld [vmem:[#allocation8 + $0x64] ss:$12 sps:$4 sm:$0xff]  }
  0x8e   : > { %v2896_v24 = vld [vmem:[#allocation5 + $0xb0] ss:$20 sps:$4 sm:$0xff]   ;;  %v2898_v28 = vld [vmem:[#allocation5 + $0x88] ss:$20 sps:$4 sm:$0xff]   ;;  %v2899_v29 = vld [vmem:[#allocation5 + $0x1a0] ss:$20 sps:$4 sm:$0xff]  }
  0x8f   : > { %870 = vmatpush1.bf16.msra.mxu0 %v2839_v30  ;;  %921 = vmatpush1.bf16.msra.mxu1 %v2840_v31  ;;  %v2926_v26 = vld [vmem:[#allocation8 + $0x60] ss:$12 sps:$4 sm:$0xff]   ;;  %v2932_v30 = vld [vmem:[#allocation8 + $0x48] ss:$12 sps:$4 sm:$0xff]   ;;  %v2965_v3 = vld [vmem:[#allocation8 + $0x2b8] ss:$12 sps:$4 sm:$0xff]  }
  0x90   : > { %871 = vmatprep.subr.bf16.mxu0 %v2841_v32  ;;  %922 = vmatprep.subr.bf16.mxu1 %v2843_v33  ;;  %v2934_v27 = vld [vmem:[#allocation8 + $0x4c] ss:$12 sps:$4 sm:$0xff]   ;;  %v2940_v32 = vld [vmem:[#allocation8 + $0x34] ss:$12 sps:$4 sm:$0xff]   ;;  %v2919_v46 = vld [vmem:[#allocation8 + $0x1fc] ss:$12 sps:$4 sm:$0xff]  }
  0x91   : > { %v2900_v31 = vld [vmem:[#allocation5 + $0x60] ss:$20 sps:$4 sm:$0xff]   ;;  %v2901_v33 = vld [vmem:[#allocation5 + $0x178] ss:$20 sps:$4 sm:$0xff]   ;;  %s2237_s11 = ssub.s32 (%p3757_p6), 5, %s2236_s16 }
  0x92   : > { %v2923_v49 = vld [vmem:[#allocation8 + $0x1e0] ss:$12 sps:$4 sm:$0xff]   ;;  %v2970_v4 = vld [vmem:[#allocation8 + $0x13c] ss:$12 sps:$4 sm:$0xff]   ;;  %v2973_v6 = vld [vmem:[#allocation8 + $0x2a4] ss:$12 sps:$4 sm:$0xff]  }
  0x93   : > { %872 = vmatpush2.bf16.msra.mxu0 %v2845_v34  ;;  %923 = vmatpush2.bf16.msra.mxu1 %v2846_v35  ;;  %v2938_v34 = vld [vmem:[#allocation8 + $0x30] ss:$12 sps:$4 sm:$0xff]   ;;  %p2238_p1 = scmp.lt.s32.totalorder (%p3757_p6), %s2237_s11, 3 }
  0x94   : > { %873 = vmatprep.subr.bf16.mxu0 %v2847_v36  ;;  %924 = vmatprep.subr.bf16.mxu1 %v2849_v37  ;;  %v2946_v35 = vld [vmem:[#allocation8 + $0x1c] ss:$12 sps:$4 sm:$0xff]  }
  0x95   : > { %v2902_v36 = vld [vmem:[#allocation5 + $0x38] ss:$20 sps:$4 sm:$0xff]   ;;  %v2903_v37 = vld [vmem:[#allocation5 + $0x150] ss:$20 sps:$4 sm:$0xff]  }
  0x96   : > { %v2983_v15 = vld [vmem:[#allocation8 + $0x270] ss:$12 sps:$4 sm:$0xff]  }
  0x97   : > { %874 = vmatpush2.bf16.msra.mxu0 %v2851_v38  ;;  %925 = vmatpush2.bf16.msra.mxu1 %v2852_v39  ;;  %v2944_v38 = vld [vmem:[#allocation8 + $0x18] ss:$12 sps:$4 sm:$0xff]  }
  0x98   : > { %875 = vmatprep.subr.bf16.mxu0 %v2853_v40  ;;  %926 = vmatprep.subr.bf16.mxu1 %v2855_v41  ;;  %v2952_v39 = vld [vmem:[#allocation8 + $0x4] ss:$12 sps:$4 sm:$0xff]   ;;  %v2904_v40 = vld [vmem:[#allocation5 + $0x10] ss:$20 sps:$4 sm:$0xff]  }
  0x99   : > { %v2907_v41 = vld [vmem:[#allocation8 + $0x22c] ss:$12 sps:$4 sm:$0xff]  }
  0x9b   : > { %876 = vmatpush2.bf16.msra.mxu0 %v2857_v42  ;;  %927 = vmatpush2.bf16.msra.mxu1 %v2858_v43  ;;  %v2950_v42 = vld [vmem:[#allocation8] ss:$12 sps:$4 sm:$0xff]   ;;  %v2905_v43 = vld [vmem:[#allocation8 + $0x228] ss:$12 sps:$4 sm:$0xff]  }
  0x9c   : > { %877 = vmatprep.subr.bf16.mxu0 %v2859_v44  ;;  %928 = vmatprep.subr.bf16.mxu1 %v2861_v45  ;;  %v2913_v44 = vld [vmem:[#allocation8 + $0x214] ss:$12 sps:$4 sm:$0xff]   ;;  %v2911_v45 = vld [vmem:[#allocation8 + $0x210] ss:$12 sps:$4 sm:$0xff]  }
  0x9f   : > { %878 = vmatpush2.bf16.msra.mxu0 %v2863_v47  ;;  %929 = vmatpush2.bf16.msra.mxu1 %v2864_v48  ;;  %v2917_v47 = vld [vmem:[#allocation8 + $0x1f8] ss:$12 sps:$4 sm:$0xff]  }
  0xa0   : > { %879 = vmatprep.subr.bf16.mxu0 %v2865_v50  ;;  %930 = vmatprep.subr.bf16.mxu1 %v2867_v52  ;;  %v2925_v48 = vld [vmem:[#allocation8 + $0x1e4] ss:$12 sps:$4 sm:$0xff]   ;;  %v2931_v50 = vld [vmem:[#allocation8 + $0x1cc] ss:$12 sps:$4 sm:$0xff]   ;;  %v2937_v52 = vld [vmem:[#allocation8 + $0x1b4] ss:$12 sps:$4 sm:$0xff]  }
  0xa3   : > { %880 = vmatpush2.bf16.msra.mxu0 %v2869_v53  ;;  %931 = vmatpush2.bf16.msra.mxu1 %v2870_v54  ;;  %v2935_v53 = vld [vmem:[#allocation8 + $0x1b0] ss:$12 sps:$4 sm:$0xff]  }
  0xa4   : > { %881 = vmatprep.subr.bf16.mxu0 %v2871_v55  ;;  %932 = vmatprep.subr.bf16.mxu1 %v2873_v56  ;;  %v2943_v54 = vld [vmem:[#allocation8 + $0x19c] ss:$12 sps:$4 sm:$0xff]   ;;  %v2941_v55 = vld [vmem:[#allocation8 + $0x198] ss:$12 sps:$4 sm:$0xff]  }
  0xa5   : > { %v2949_v56 = vld [vmem:[#allocation8 + $0x184] ss:$12 sps:$4 sm:$0xff]  }
  0xa7   : > { %882 = vmatpush2.bf16.msra.mxu0 %v2875_v57  ;;  %933 = vmatpush2.bf16.msra.mxu1 %v2876_v58  ;;  %v2947_v57 = vld [vmem:[#allocation8 + $0x180] ss:$12 sps:$4 sm:$0xff]  }
  0xa8   : > { %883 = vmatprep.subr.bf16.mxu0 %v2877_v59  ;;  %934 = vmatprep.subr.bf16.mxu1 %v2879_v60  ;;  %v2955_v58 = vld [vmem:[#allocation8 + $0x2ec] ss:$12 sps:$4 sm:$0xff]   ;;  %v2953_v59 = vld [vmem:[#allocation8 + $0x2e8] ss:$12 sps:$4 sm:$0xff]  }
  0xa9   : > { %v2958_v60 = vld [vmem:[#allocation8 + $0x16c] ss:$12 sps:$4 sm:$0xff]  }
  0xab   : > { %884 = vmatpush2.bf16.msra.mxu0 %v2881_v61  ;;  %935 = vmatpush2.bf16.msra.mxu1 %v2882_v62  ;;  %v2956_v61 = vld [vmem:[#allocation8 + $0x168] ss:$12 sps:$4 sm:$0xff]  }
  0xac   : > { %885 = vmatprep.subr.bf16.mxu0 %v2883_v63  ;;  %936 = vmatprep.subr.bf16.mxu1 %v2885_v0  ;;  %v2961_v62 = vld [vmem:[#allocation8 + $0x2d4] ss:$12 sps:$4 sm:$0xff]   ;;  %v2959_v63 = vld [vmem:[#allocation8 + $0x2d0] ss:$12 sps:$4 sm:$0xff]  }
  0xad   : > { %v2964_v0 = vld [vmem:[#allocation8 + $0x154] ss:$12 sps:$4 sm:$0xff]  }
  0xaf   : > { %886 = vmatpush2.bf16.msra.mxu0 %v2887_v1  ;;  %937 = vmatpush2.bf16.msra.mxu1 %v2888_v2  ;;  %v2962_v1 = vld [vmem:[#allocation8 + $0x150] ss:$12 sps:$4 sm:$0xff]  }
  0xb0   : > { %2595 = vmatprep.subr.bf16.mxu0 %v2889_v5  ;;  %1922 = vmatprep.subr.bf16.mxu1 %v2910_v8  ;;  %v2967_v2 = vld [vmem:[#allocation8 + $0x2bc] ss:$12 sps:$4 sm:$0xff]   ;;  %v2968_v5 = vld [vmem:[#allocation8 + $0x138] ss:$12 sps:$4 sm:$0xff]  }
  0xb1   : > { %v2976_v8 = vld [vmem:[#allocation8 + $0x124] ss:$12 sps:$4 sm:$0xff]  }
  0xb2   : > { %888 = vmatmul.mubr.bf16.vlgmr.msra.gmra.mxu0 %v3491_v7  ;;  %939 = vmatmul.mubr.bf16.vlgmr.msra.gmra.mxu1 %v3491_v7 }
  0xb3   : > { %2596 = vmatpush3.bf16.msra.mxu0 %v2890_v9  ;;  %897 = vmatprep.mubr.bf16.mxu0 %v3493_v10  ;;  %v2974_v9 = vld [vmem:[#allocation8 + $0x120] ss:$12 sps:$4 sm:$0xff]  }
  0xb4   : > { %2597 = vmatprep.subr.bf16.mxu0 %v2891_v11  ;;  %948 = vmatprep.mubr.bf16.mxu1 %v3493_v10  ;;  %v2977_v11 = vld [vmem:[#allocation8 + $0x288] ss:$12 sps:$4 sm:$0xff]  }
  0xb5   : > { %1923 = vmatpush1.bf16.msra.mxu1 %v2908_v12  ;;  %v2982_v12 = vld [vmem:[#allocation8 + $0x10c] ss:$12 sps:$4 sm:$0xff]  }
  0xb6   : > { %1924 = vmatprep.subr.bf16.mxu1 %v2916_v13  ;;  %v2980_v13 = vld [vmem:[#allocation8 + $0x108] ss:$12 sps:$4 sm:$0xff]  }
  0xb7   : > { %2598 = vmatpush3.bf16.msra.mxu0 %v2892_v14  ;;  %v2985_v14 = vld [vmem:[#allocation8 + $0x274] ss:$12 sps:$4 sm:$0xff]  }
  0xb8   : > { %2599 = vmatprep.subr.bf16.mxu0 %v2893_v16  ;;  %v2988_v16 = vld [vmem:[#allocation8 + $0xf4] ss:$12 sps:$4 sm:$0xff]  }
  0xb9   : > { %1925 = vmatpush1.bf16.msra.mxu1 %v2914_v17  ;;  %v2986_v17 = vld [vmem:[#allocation8 + $0xf0] ss:$12 sps:$4 sm:$0xff]  }
  0xba   : > { %898 = vmatmul.mubr.bf16.gmra.mxu0 %v3500_v18  ;;  %949 = vmatmul.mubr.bf16.gmra.mxu1 %v3500_v18 }
  0xbb   : > { %2600 = vmatpush3.bf16.msra.mxu0 %v2894_v19  ;;  %989 = vmatprep.mubr.bf16.mxu0 %v3484_v51  ;;  %v2929_v51 = vld [vmem:[#allocation8 + $0x1c8] ss:$12 sps:$4 sm:$0xff]   ;;  %v2989_v19 = vld [vmem:[#allocation8 + $0x258] ss:$12 sps:$4 sm:$0xff]  }
  0xbc   : > { %2601 = vmatprep.subr.bf16.mxu0 %v2895_v20  ;;  %1926 = vmatprep.subr.bf16.mxu1 %v2922_v21  ;;  %v2994_v20 = vld [vmem:[#allocation8 + $0xdc] ss:$12 sps:$4 sm:$0xff]   ;;  %v2992_v21 = vld [vmem:[#allocation8 + $0xd8] ss:$12 sps:$4 sm:$0xff]  }
  0xbd   : > { %1927 = vmatpush1.bf16.msra.mxu1 %v2920_v22  ;;  %v2997_v22 = vld [vmem:[#allocation8 + $0x244] ss:$12 sps:$4 sm:$0xff]  }
  0xbe   : > { %1928 = vmatprep.subr.bf16.mxu1 %v2928_v23  ;;  %v2995_v23 = vld [vmem:[#allocation8 + $0x240] ss:$12 sps:$4 sm:$0xff]  }
  0xbf   : > { %2602 = vmatpush3.bf16.msra.mxu0 %v2896_v24  ;;  %v2998_v24 = vld [vmem:[#allocation8 + $0xc0] ss:$12 sps:$4 sm:$0xff]  }
  0xc0   : > { %2603 = vmatprep.subr.bf16.mxu0 %v2897_v25  ;;  %v3000_v25 = vld [vmem:[#allocation8 + $0xc4] ss:$12 sps:$4 sm:$0xff]  }
  0xc1   : > { %1929 = vmatpush1.bf16.msra.mxu1 %v2926_v26  ;;  %v3001_v26 = vld [vmem:[#allocation8 + $0x170] ss:$12 sps:$4 sm:$0xff]  }
  0xc2   : > { %1930 = vmatprep.subr.bf16.mxu1 %v2934_v27  ;;  %v3004_v27 = vld [vmem:[#allocation8 + $0x3ac] ss:$12 sps:$4 sm:$0xff]  }
  0xc3   : > { %2604 = vmatpush3.bf16.msra.mxu0 %v2898_v28  ;;  %v414_v28 = vlaneseq }
  0xc4   : > { %2605 = vmatprep.subr.bf16.mxu0 %v2899_v29 }
  0xc5   : > { %1931 = vmatpush1.bf16.msra.mxu1 %v2932_v30  ;;  %v3508_v29 = vshrl.u32 %v414_v28, 7 }
  0xc6   : > { %1932 = vmatprep.subr.bf16.mxu1 %v2940_v32  ;;  %v3512_v32 = vld [vmem:[#allocation7] sm:$0x1f] }
  0xc7   : > { %2606 = vmatpush3.bf16.msra.mxu0 %v2900_v31  ;;  %v416_v30 = vsub.s32 0, %v3508_v29  ;;  %v424_v31 = vsub.s32 2, %v3508_v29 }
  0xc8   : > { %2607 = vmatprep.subr.bf16.mxu0 %v2901_v33  ;;  %v420_v33 = vsub.s32 1, %v3508_v29 }
  0xc9   : > { %1933 = vmatpush1.bf16.msra.mxu1 %v2938_v34  ;;  %v428_v34 = vsub.s32 3, %v3508_v29 }
  0xca   : > { %1934 = vmatprep.subr.bf16.mxu1 %v2946_v35  ;;  %v417_v35 = vrot.slane %v3512_v32, %v416_v30 }
  0xcb   : > { %2608 = vmatpush3.bf16.msra.mxu0 %v2902_v36  ;;  %v425_v36 = vrot.slane %v3512_v32, %v424_v31 }
  0xcc   : > { %2609 = vmatprep.subr.bf16.mxu0 %v2903_v37 }
  0xcd   : > { %1935 = vmatpush1.bf16.msra.mxu1 %v2944_v38 }
  0xce   : > { %1936 = vmatprep.subr.bf16.mxu1 %v2952_v39  ;;  %v421_v39 = vrot.slane %v3512_v32, %v420_v33 }
  0xcf   : > { %2610 = vmatpush3.bf16.msra.mxu0 %v2904_v40  ;;  %v429_v40 = vrot.slane %v3512_v32, %v428_v34  ;;  %v432_v34 = vsub.s32 4, %v3508_v29 }
  0xd0   : > { %1973 = vmatprep.subr.bf16.mxu0 %v2907_v41 }
  0xd1   : > { %1937 = vmatpush1.bf16.msra.mxu1 %v2950_v42 }
  0xd2   : > { %990 = vmatmul.mubr.bf16.vlgmr.msra.gmra.mxu0 %v3491_v7  ;;  %1938 = vmatprep.subr.bf16.mxu1 %v2958_v60  ;;  %v2971_v7 = vld [vmem:[#allocation8 + $0x2a0] ss:$12 sps:$4 sm:$0xff]  }
  0xd3   : > { %997 = vmatprep.mubr.bf16.mxu0 %v3493_v10  ;;  %1974 = vmatpush1.bf16.msra.mxu0 %v2905_v43  ;;  %v2979_v10 = vld [vmem:[#allocation8 + $0x28c] ss:$12 sps:$4 sm:$0xff]  }
  0xd4   : > { %1975 = vmatprep.subr.bf16.mxu0 %v2913_v44 }
  0xd5   : > { %1939 = vmatpush2.bf16.msra.mxu1 %v2956_v61 }
  0xd6   : > { %1940 = vmatprep.subr.bf16.mxu1 %v2964_v0 }
  0xd7   : > { %1976 = vmatpush1.bf16.msra.mxu0 %v2911_v45 }
  0xd8   : > { %1977 = vmatprep.subr.bf16.mxu0 %v2919_v46 }
  0xd9   : > { %1941 = vmatpush2.bf16.msra.mxu1 %v2962_v1 }
  0xda   : > { %998 = vmatmul.mubr.bf16.gmra.mxu0 %v3500_v18  ;;  %1942 = vmatprep.subr.bf16.mxu1 %v2970_v4  ;;  %v2991_v18 = vld [vmem:[#allocation8 + $0x25c] ss:$12 sps:$4 sm:$0xff]  }
  0xdb   : > { %1978 = vmatpush1.bf16.msra.mxu0 %v2917_v47 }
  0xdc   : > { %1979 = vmatprep.subr.bf16.mxu0 %v2925_v48 }
  0xdd   : > { %1943 = vmatpush2.bf16.msra.mxu1 %v2968_v5 }
  0xde   : > { %1944 = vmatprep.subr.bf16.mxu1 %v2976_v8 }
  0xdf   : > { %1980 = vmatpush1.bf16.msra.mxu0 %v2923_v49 }
  0xe0   : > { %1981 = vmatprep.subr.bf16.mxu0 %v2931_v50 }
  0xe1   : > { %1945 = vmatpush2.bf16.msra.mxu1 %v2974_v9 }
  0xe2   : > { %1946 = vmatprep.subr.bf16.mxu1 %v2982_v12 }
  0xe3   : > { %1982 = vmatpush1.bf16.msra.mxu0 %v2929_v51 }
  0xe4   : > { %1983 = vmatprep.subr.bf16.mxu0 %v2937_v52 }
  0xe5   : > { %1947 = vmatpush2.bf16.msra.mxu1 %v2980_v13 }
  0xe6   : > { %1948 = vmatprep.subr.bf16.mxu1 %v2988_v16 }
  0xe7   : > { %1984 = vmatpush1.bf16.msra.mxu0 %v2935_v53 }
  0xe8   : > { %1985 = vmatprep.subr.bf16.mxu0 %v2943_v54 }
  0xe9   : > { %1949 = vmatpush2.bf16.msra.mxu1 %v2986_v17 }
  0xea   : > { %1950 = vmatprep.subr.bf16.mxu1 %v2994_v20 }
  0xeb   : > { %1986 = vmatpush1.bf16.msra.mxu0 %v2941_v55 }
  0xec   : > { %1987 = vmatprep.subr.bf16.mxu0 %v2949_v56 }
  0xed   : > { %1951 = vmatpush2.bf16.msra.mxu1 %v2992_v21 }
  0xee   : > { %1952 = vmatprep.subr.bf16.mxu1 %v3000_v25 }
  0xef   : > { %1988 = vmatpush1.bf16.msra.mxu0 %v2947_v57 }
  0xf0   : > { %1989 = vmatprep.subr.bf16.mxu0 %v2955_v58 }
  0xf1   : > { %1953 = vmatpush2.bf16.msra.mxu1 %v2998_v24 }
  0xf2   : > { %2024 = vmatprep.subr.bf16.mxu1 %v3004_v27 }
  0xf3   : > { %1990 = vmatpush2.bf16.msra.mxu0 %v2953_v59 }
  0xf4   : > { %1991 = vmatprep.subr.bf16.mxu0 %v2961_v62 }
  0xf7   : > { %1992 = vmatpush2.bf16.msra.mxu0 %v2959_v63 }
  0xf8   : > { %1993 = vmatprep.subr.bf16.mxu0 %v2967_v2 }
  0xfb   : > { %1994 = vmatpush2.bf16.msra.mxu0 %v2965_v3 }
  0xfc   : > { %1995 = vmatprep.subr.bf16.mxu0 %v2973_v6 }
  0xff   : > { %1996 = vmatpush2.bf16.msra.mxu0 %v2971_v7 }
 0x100   : > { %1997 = vmatprep.subr.bf16.mxu0 %v2979_v10 }
 0x103   : > { %1998 = vmatpush2.bf16.msra.mxu0 %v2977_v11 }
 0x104   : > { %1999 = vmatprep.subr.bf16.mxu0 %v2985_v14 }
 0x107   : > { %2000 = vmatpush2.bf16.msra.mxu0 %v2983_v15 }
 0x108   : > { %2001 = vmatprep.subr.bf16.mxu0 %v2991_v18 }
 0x10b   : > { %2002 = vmatpush2.bf16.msra.mxu0 %v2989_v19 }
 0x10c   : > { %2003 = vmatprep.subr.bf16.mxu0 %v2997_v22 }
 0x10f   : > { %2004 = vmatpush2.bf16.msra.mxu0 %v2995_v23 }
 0x110   : > { %2623 = vmatprep.subr.bf16.mxu0 %v3001_v26 }
 0x172   : > { %v889_v37 = vpop.f32.mrf.mxu0  ;;  %v940_v38 = vpop.f32.mrf.mxu1 }
 0x173   : > { %v3526_v41 = vadd.f32 %v889_v37, %v417_v35  ;;  %v3528_v42 = vadd.f32 %v940_v38, %v425_v36 }
 0x174   : > { %v891_v43 = vpop.f32.mrf.mxu0  ;;  %v942_v44 = vpop.f32.mrf.mxu1 }
 0x175   : > { %v1020_v45 = vmin.f32 %v3526_v41, 0.0  ;;  %v1022_v46 = vmin.f32 %v3528_v42, 0.0  ;;  %v3532_v47 = vadd.f32 %v891_v43, %v421_v39  ;;  %v3534_v48 = vadd.f32 %v942_v44, %v429_v40 }
 0x176   : > { %v893_v49 = vpop.f32.mrf.mxu0  ;;  %v944_v50 = vpop.f32.mrf.mxu1  ;;  %vm1005_vm0 = vcmp.gt.f32.partialorder %v3526_v41, 0.0  ;;  %vm1007_vm1 = vcmp.gt.f32.partialorder %v3528_v42, 0.0 }
 0x177   : > { %v1035_v51 = vmul.f32 1.442695, %v1020_v45  ;;  %v1039_v52 = vmul.f32 1.442695, %v1022_v46  ;;  %v3536_v53 = vadd.f32 %v893_v49, %v417_v35  ;;  %v3538_v54 = vadd.f32 %v944_v50, %v425_v36 }
 0x178   : > { %v1021_v55 = vmin.f32 %v3532_v47, 0.0  ;;  %v1023_v56 = vmin.f32 %v3534_v48, 0.0  ;;  %v895_v57 = vpop.f32.mrf.mxu0  ;;  %v946_v58 = vpop.f32.mrf.mxu1  ;;  %vm1006_vm2 = vcmp.gt.f32.partialorder %v3532_v47, 0.0  ;;  %vm1008_vm3 = vcmp.gt.f32.partialorder %v3534_v48, 0.0 }
 0x179   : > { %3065 = vpow2.f32 %v1035_v51  ;;  %v1025_v59 = vmin.f32 %v3536_v53, 0.0  ;;  %v1027_v62 = vmin.f32 %v3538_v54, 0.0  ;;  %v3544_v2 = vadd.f32 %v895_v57, %v421_v39 }
 0x17a   : > { %3067 = vpow2.f32 %v1039_v52  ;;  %v1037_v60 = vmul.f32 1.442695, %v1021_v55  ;;  %v1041_v61 = vmul.f32 1.442695, %v1023_v56  ;;  %v899_v63 = vpop.f32.mrf.mxu0  ;;  %v950_v0 = vpop.f32.mrf.mxu1  ;;  %v3546_v3 = vadd.f32 %v946_v58, %v429_v40 }
 0x17b   : > { %v1045_v1 = vmul.f32 1.442695, %v1025_v59  ;;  %v3548_v4 = vadd.f32 %v899_v63, %v417_v35  ;;  %v1049_v5 = vmul.f32 1.442695, %v1027_v62  ;;  %v3550_v7 = vadd.f32 %v950_v0, %v425_v36 }
 0x17c   : > { %3069 = vpow2.f32 %v1037_v60  ;;  %v901_v6 = vpop.f32.mrf.mxu0  ;;  %v952_v8 = vpop.f32.mrf.mxu1  ;;  %v1026_v9 = vmin.f32 %v3544_v2, 0.0  ;;  %v1028_v10 = vmin.f32 %v3546_v3, 0.0  ;;  %vm1010_vm4 = vcmp.gt.f32.partialorder %v3536_v53, 0.0 }
 0x17d   : > { %3071 = vpow2.f32 %v1041_v61  ;;  %v1030_v11 = vmin.f32 %v3548_v4, 0.0  ;;  %v3555_v15 = vadd.f32 %v901_v6, %v421_v39  ;;  %v1032_v18 = vmin.f32 %v3550_v7, 0.0  ;;  %v3005_v6 = vld [vmem:[#allocation8 + $0xb0] ss:$12 sps:$4 sm:$0xff]  }
 0x17e   : > { %3073 = vpow2.f32 %v1045_v1  ;;  %v903_v12 = vpop.f32.mrf.mxu0  ;;  %v954_v13 = vpop.f32.mrf.mxu1  ;;  %v1047_v14 = vmul.f32 1.442695, %v1026_v9  ;;  %v1051_v16 = vmul.f32 1.442695, %v1028_v10  ;;  %v3558_v19 = vadd.f32 %v952_v8, %v429_v40  ;;  %v3002_v1 = vld [vmem:[#allocation8 + $0x3a8] ss:$12 sps:$4 sm:$0xff]  }
 0x17f   : > { %3075 = vpow2.f32 %v1049_v5  ;;  %v1055_v17 = vmul.f32 1.442695, %v1030_v11  ;;  %v1031_v22 = vmin.f32 %v3555_v15, 0.0  ;;  %v1059_v23 = vmul.f32 1.442695, %v1032_v18 }
 0x180   : > { %v904_v20 = vpop.f32.mrf.mxu0  ;;  %v955_v21 = vpop.f32.mrf.mxu1  ;;  %3077 = vpow2.f32 %v1047_v14  ;;  %v1033_v24 = vmin.f32 %v3558_v19, 0.0  ;;  %v3566_v40 = vrot.slane %v3512_v32, %v432_v34  ;;  %vm1012_vm5 = vcmp.gt.f32.partialorder %v3538_v54, 0.0  ;;  %v3006_v11 = vld [vmem:[#allocation8 + $0x158] ss:$12 sps:$4 sm:$0xff]   ;;  %v3007_v18 = vld [vmem:[#allocation8 + $0x390] ss:$12 sps:$4 sm:$0xff]  }
 0x181   : > { %3079 = vpow2.f32 %v1051_v16  ;;  %v1057_v25 = vmul.f32 1.442695, %v1031_v22  ;;  %vm1011_vm6 = vcmp.gt.f32.partialorder %v3544_v2, 0.0  ;;  %vm1013_vm7 = vcmp.gt.f32.partialorder %v3546_v3, 0.0  ;;  %v3010_v22 = vld [vmem:[#allocation8 + $0x98] ss:$12 sps:$4 sm:$0xff]  }
 0x182   : > { %3081 = vpow2.f32 %v1055_v17  ;;  %v1061_v26 = vmul.f32 1.442695, %v1033_v24  ;;  %vm1017_vm8 = vcmp.gt.f32.partialorder %v3550_v7, 0.0  ;;  %vm1018_vm9 = vcmp.gt.f32.partialorder %v3558_v19, 0.0  ;;  %v3014_v24 = vld [vmem:[#allocation8 + $0x37c] ss:$12 sps:$4 sm:$0xff]  }
 0x183   : > { %3083 = vpow2.f32 %v1059_v23  ;;  %vm1016_vm10 = vcmp.gt.f32.partialorder %v3555_v15, 0.0  ;;  %vm1015_vm11 = vcmp.gt.f32.partialorder %v3548_v4, 0.0 }
 0x184   : > { %3085 = vpow2.f32 %v1057_v25 }
 0x185   : > { %3087 = vpow2.f32 %v1061_v26 }
 0x186   : > { %v3066_v27 = vpop.eup %3065 }
 0x187   : > { %v3068_v28 = vpop.eup %3067  ;;  %v2449_v43 = vadd.f32 -1.0, %v3066_v27 }
 0x188   : > { %v2451_v49 = vadd.f32 -1.0, %v3068_v28 }
 0x189   : > { %v3070_v35 = vpop.eup %3069  ;;  %v1080_v58 = vsel %vm1005_vm0, %v3526_v41, %v2449_v43  ;;  %v3016_v43 = vld [vmem:[#allocation8 + $0x128] ss:$12 sps:$4 sm:$0xff]  }
 0x18a   : > { %v3072_v36 = vpop.eup %3071  ;;  %v2450_v45 = vadd.f32 -1.0, %v3070_v35 }
 0x18b   : > { %v3074_v37 = vpop.eup %3073  ;;  %v2452_v50 = vadd.f32 -1.0, %v3072_v36  ;;  %v3012_v36 = vld [vmem:[#allocation8 + $0x378] ss:$12 sps:$4 sm:$0xff]  }
 0x18c   : > { %v3076_v38 = vpop.eup %3075  ;;  %v2454_v39 = vadd.f32 -1.0, %v3074_v37  ;;  %v1081_v60 = vsel %vm1006_vm2, %v3532_v47, %v2450_v45 }
 0x18d   : > { %v2456_v44 = vadd.f32 -1.0, %v3076_v38  ;;  %v3078_v46 = vpop.eup %3077  ;;  %v1083_v41 = vsel %vm1008_vm3, %v3534_v48, %v2452_v50 }
 0x18e   : > { %v3080_v51 = vpop.eup %3079  ;;  %v2455_v32 = vadd.f32 -1.0, %v3078_v46  ;;  %v1085_v55 = vsel %vm1010_vm4, %v3536_v53, %v2454_v39  ;;  %v1082_v53 = vsel %vm1007_vm1, %v3528_v42, %v2451_v49  ;;  %v3009_v42 = vld [vmem:[#allocation8 + $0x394] ss:$12 sps:$4 sm:$0xff]  }
 0x18f   : > { %v3082_v52 = vpop.eup %3081  ;;  %v2457_v56 = vadd.f32 -1.0, %v3080_v51  ;;  %v1087_v59 = vsel %vm1012_vm5, %v3538_v54, %v2456_v44  ;;  %v3596_v5 = vpack.c.bf16 %v1085_v55, %v1080_v58  ;;  %v3015_v39 = vld [vmem:[#allocation8 + $0x80] ss:$12 sps:$4 sm:$0xff]   ;;  %v3019_v44 = vld [vmem:[#allocation8 + $0x364] ss:$12 sps:$4 sm:$0xff]  }
 0x190   : > { %v3084_v57 = vpop.eup %3083  ;;  %v1086_v61 = vsel %vm1011_vm6, %v3544_v2, %v2455_v32  ;;  %v3600_v10 = vpack.c.bf16 %v1087_v59, %v1082_v53  ;;  %v3017_v49 = vld [vmem:[#allocation8 + $0x360] ss:$12 sps:$4 sm:$0xff]   ;;  %v3283_v59 = vmov 0   ;;  %v3026_v53 = vld [vmem:[#allocation8 + $0xf8] ss:$12 sps:$4 sm:$0xff]  }
 0x191   : > { %v3086_v62 = vpop.eup %3085  ;;  %v3588_v0 = vpack.c.bf16 %v1086_v61, %v1081_v60  ;;  %v1088_v54 = vsel %vm1013_vm7, %v3546_v3, %v2457_v56  ;;  %v2461_v9 = vadd.f32 -1.0, %v3084_v57  ;;  %v2459_v3 = vadd.f32 -1.0, %v3082_v52  ;;  %v3020_v52 = vld [vmem:[#allocation8 + $0x68] ss:$12 sps:$4 sm:$0xff]   ;;  %v3024_v55 = vld [vmem:[#allocation8 + $0x34c] ss:$12 sps:$4 sm:$0xff]  }
 0x192   : > { %v2611_v63 = vpop.f32.mrf.mxu0  ;;  %v3088_v47 = vpop.eup %3087  ;;  %v3598_v2 = vpack.c.bf16 %v1088_v54, %v1083_v41  ;;  %v2460_v8 = vadd.f32 -1.0, %v3086_v62  ;;  %v3021_v56 = vld [vmem:[#allocation8 + $0x110] ss:$12 sps:$4 sm:$0xff]   ;;  %v3022_v60 = vld [vmem:[#allocation8 + $0x348] ss:$12 sps:$4 sm:$0xff]  }
 0x193   : > { %1954 = vmatprep.mubr.bf16.mxu1 %v3588_v0  ;;  %v2462_v12 = vadd.f32 -1.0, %v3088_v47  ;;  %v1092_v23 = vsel %vm1017_vm8, %v3550_v7, %v2461_v9  ;;  %v1090_v26 = vsel %vm1015_vm11, %v3548_v4, %v2459_v3  ;;  %v3029_v62 = vld [vmem:[#allocation8 + $0x334] ss:$12 sps:$4 sm:$0xff]   ;;  %v3034_v41 = vld [vmem:[#allocation8 + $0x31c] ss:$12 sps:$4 sm:$0xff]  }
 0x194   : > { %v2612_v48 = vpop.f32.mrf.mxu0  ;;  %2005 = vmatprep.mubr.bf16.mxu0 %v3598_v2  ;;  %1955 = vmatmul.mubr.bf16.vlgmr.msra.gmra.mxu1 %v3596_v5  ;;  %v1091_v14 = vsel %vm1016_vm10, %v3555_v15, %v2460_v8  ;;  %v3626_v35 = vpack.c.bf16 %v1092_v23, %v1092_v23  ;;  %v3631_v38 = vpack.c.bf16 %v1090_v26, %v1090_v26  ;;  %v3031_v54 = vld [vmem:[#allocation8 + $0xe0] ss:$12 sps:$4 sm:$0xff]   ;;  %v3032_v47 = vld [vmem:[#allocation8 + $0x318] ss:$12 sps:$4 sm:$0xff]   ;;  %v3040_v3 = vld [vmem:[#allocation8 + $0x8] ss:$12 sps:$4 sm:$0xff]  }
 0x195   : > { %v2613_v13 = vadd.f32 %v2612_v48, %v2611_v63  ;;  %2006 = vmatmul.mubr.bf16.vlgmr.msra.gmra.mxu0 %v3600_v10  ;;  %2025 = vmatpush1.bf16.msra.mxu1 %v3002_v1  ;;  %v3608_v17 = vpack.c.bf16 %v1091_v14, %v1091_v14  ;;  %v1093_v20 = vsel %vm1018_vm9, %v3558_v19, %v2462_v12  ;;  %v3011_v19 = vld [vmem:[#allocation8 + $0x140] ss:$12 sps:$4 sm:$0xff]   ;;  %v3027_v63 = vld [vmem:[#allocation8 + $0x330] ss:$12 sps:$4 sm:$0xff]   ;;  %v3046_v26 = vld [vmem:[#allocation8 + $0x218] ss:$12 sps:$4 sm:$0xff]  }
 0x196   : > { %v2614_v16 = vpop.f32.mrf.mxu0  ;;  %2624 = vmatpush3.bf16.msra.mxu0 %v3005_v6  ;;  %2026 = vmatprep.subr.bf16.mxu1 %v3009_v42  ;;  %v3617_v15 = vpack.c.bf16 %v1093_v20, %v1093_v20  ;;  %v3035_v6 = vld [vmem:[#allocation8 + $0x20] ss:$12 sps:$4 sm:$0xff]   ;;  %v3039_v8 = vld [vmem:[#allocation8 + $0x304] ss:$12 sps:$4 sm:$0xff]   ;;  %v3036_v42 = vld [vmem:[#allocation8 + $0xc8] ss:$12 sps:$4 sm:$0xff]  }
 0x197   : > { %v3615_v21 = vadd.f32 %v2613_v13, %v3566_v40  ;;  %1964 = vmatprep.mubr.bf16.mxu1 %v3608_v17  ;;  %2625 = vmatprep.subr.bf16.mxu0 %v3006_v11  ;;  %v3037_v11 = vld [vmem:[#allocation8 + $0x300] ss:$12 sps:$4 sm:$0xff]   ;;  %v3042_v13 = vld [vmem:[#allocation8 + $0x2f0] ss:$12 sps:$4 sm:$0xff]  }
 0x198   : > { %v2615_v25 = vpop.f32.mrf.mxu0  ;;  %2015 = vmatprep.mubr.bf16.mxu0 %v3617_v15  ;;  %v3041_v14 = vld [vmem:[#allocation8 + $0x3b0] ss:$12 sps:$4 sm:$0xff]  }
 0x199   : > { %v1024_v27 = vmin.f32 %v3615_v21, 0.0  ;;  %v2616_v28 = vadd.f32 %v2615_v25, %v2614_v16  ;;  %2027 = vmatpush1.bf16.msra.mxu1 %v3007_v18  ;;  %vm1009_vm12 = vcmp.gt.f32.partialorder %v3615_v21, 0.0  ;;  %v3043_v23 = vld [vmem:[#allocation8 + $0x230] ss:$12 sps:$4 sm:$0xff]   ;;  %v3045_v25 = vld [vmem:[#allocation8 + $0x2d8] ss:$12 sps:$4 sm:$0xff]  }
 0x19a   : > { %v2617_v34 = vpop.f32.mrf.mxu0  ;;  %2626 = vmatpush3.bf16.msra.mxu0 %v3010_v22  ;;  %2028 = vmatprep.subr.bf16.mxu1 %v3014_v24  ;;  %v3044_v24 = vld [vmem:[#allocation8 + $0x398] ss:$12 sps:$4 sm:$0xff]  }
 0x19b   : > { %v1043_v37 = vmul.f32 1.442695, %v1024_v27  ;;  %v3629_v7 = vadd.f32 %v2616_v28, %v3566_v40  ;;  %2627 = vmatprep.subr.bf16.mxu0 %v3011_v19  ;;  %v3047_v27 = vld [vmem:[#allocation8 + $0x380] ss:$12 sps:$4 sm:$0xff]  }
 0x19c   : > { %v2618_v4 = vpop.f32.mrf.mxu0  ;;  %1965 = vmatmul.mubr.bf16.gmra.mxu1 %v3631_v38 }
 0x19d   : > { %3089 = vpow2.f32 %v1043_v37  ;;  %v1029_v45 = vmin.f32 %v3629_v7, 0.0  ;;  %v2619_v46 = vadd.f32 %v2618_v4, %v2617_v34  ;;  %2016 = vmatmul.mubr.bf16.gmra.mxu0 %v3626_v35  ;;  %2029 = vmatpush1.bf16.msra.mxu1 %v3012_v36  ;;  %vm1014_vm13 = vcmp.gt.f32.partialorder %v3629_v7, 0.0  ;;  %v3049_v34 = vld [vmem:[#allocation8 + $0x200] ss:$12 sps:$4 sm:$0xff]   ;;  %v3050_v36 = vld [vmem:[#allocation8 + $0x368] ss:$12 sps:$4 sm:$0xff]  }
 0x19e   : > { %v2620_v50 = vpop.f32.mrf.mxu0  ;;  %2628 = vmatpush3.bf16.msra.mxu0 %v3015_v39  ;;  %2107 = vmatprep.mubr.bf16.mxu0 %v3588_v0  ;;  %v3030_v0 = vld [vmem:[#allocation8 + $0x38] ss:$12 sps:$4 sm:$0xff]   ;;  %v3052_v37 = vld [vmem:[#allocation8 + $0x1e8] ss:$12 sps:$4 sm:$0xff]   ;;  %v3053_v39 = vld [vmem:[#allocation8 + $0x350] ss:$12 sps:$4 sm:$0xff]  }
 0x19f   : > { %v1053_v51 = vmul.f32 1.442695, %v1029_v45  ;;  %v3637_v32 = vadd.f32 %v2619_v46, %v3566_v40  ;;  %2629 = vmatprep.subr.bf16.mxu0 %v3016_v43  ;;  %2030 = vmatprep.subr.bf16.mxu1 %v3019_v44  ;;  %v3025_v40 = vld [vmem:[#allocation8 + $0x50] ss:$12 sps:$4 sm:$0xff]   ;;  %v3057_v43 = vld [vmem:[#allocation8 + $0x278] ss:$12 sps:$4 sm:$0xff]  }
 0x1a0   : > { %v2621_v57 = vpop.f32.mrf.mxu0  ;;  %2056 = vmatprep.mubr.bf16.mxu1 %v3283_v59  ;;  %v3055_v4 = vld [vmem:[#allocation8 + $0x1d0] ss:$12 sps:$4 sm:$0xff]   ;;  %v3056_v44 = vld [vmem:[#allocation8 + $0x338] ss:$12 sps:$4 sm:$0xff]   ;;  %v3059_v46 = vld [vmem:[#allocation8 + $0x320] ss:$12 sps:$4 sm:$0xff]  }
 0x1a1   : > { %3091 = vpow2.f32 %v1053_v51  ;;  %v1034_v58 = vmin.f32 %v3637_v32, 0.0  ;;  %2031 = vmatpush1.bf16.msra.mxu1 %v3017_v49  ;;  %vm1019_vm14 = vcmp.gt.f32.partialorder %v3637_v32, 0.0  ;;  %v3058_v45 = vld [vmem:[#allocation8 + $0x1b8] ss:$12 sps:$4 sm:$0xff]   ;;  %v3061_v49 = vld [vmem:[#allocation8 + $0x1a0] ss:$12 sps:$4 sm:$0xff]  }
 0x1a2   : > { %2630 = vmatpush3.bf16.msra.mxu0 %v3020_v52  ;;  %2032 = vmatprep.subr.bf16.mxu1 %v3024_v55  ;;  %v3062_v50 = vld [vmem:[#allocation8 + $0x308] ss:$12 sps:$4 sm:$0xff]  }
 0x1a3   : > { %v1063_v61 = vmul.f32 1.442695, %v1034_v58  ;;  %2631 = vmatprep.subr.bf16.mxu0 %v3021_v56  ;;  %v3064_v51 = vld [vmem:[#allocation8 + $0x188] ss:$12 sps:$4 sm:$0xff]  }
 0x1a5   : > { %3093 = vpow2.f32 %v1063_v61  ;;  %2033 = vmatpush1.bf16.msra.mxu1 %v3022_v60 }
 0x1a6   : > { %2632 = vmatpush3.bf16.msra.mxu0 %v3025_v40  ;;  %2034 = vmatprep.subr.bf16.mxu1 %v3029_v62 }
 0x1a7   : > { %2633 = vmatprep.subr.bf16.mxu0 %v3026_v53 }
 0x1a9   : > { %2035 = vmatpush1.bf16.msra.mxu1 %v3027_v63 }
 0x1aa   : > { %v3090_v1 = vpop.eup %3089  ;;  %2634 = vmatpush3.bf16.msra.mxu0 %v3030_v0  ;;  %2036 = vmatprep.subr.bf16.mxu1 %v3034_v41 }
 0x1ab   : > { %2635 = vmatprep.subr.bf16.mxu0 %v3031_v54  ;;  %v2453_v9 = vadd.f32 -1.0, %v3090_v1 }
 0x1ad   : > { %2037 = vmatpush1.bf16.msra.mxu1 %v3032_v47  ;;  %v1084_v16 = vsel %vm1009_vm12, %v3615_v21, %v2453_v9  ;;  %v3048_v21 = vld [vmem:[#allocation8 + $0x2c0] ss:$12 sps:$4 sm:$0xff]  }
 0x1ae   : > { %v3092_v48 = vpop.eup %3091  ;;  %2636 = vmatpush3.bf16.msra.mxu0 %v3035_v6  ;;  %2038 = vmatprep.subr.bf16.mxu1 %v3039_v8 }
 0x1af   : > { %v2458_v12 = vadd.f32 -1.0, %v3092_v48  ;;  %2637 = vmatprep.subr.bf16.mxu0 %v3036_v42 }
 0x1b1   : > { %v1089_v18 = vsel %vm1014_vm13, %v3629_v7, %v2458_v12  ;;  %2039 = vmatpush1.bf16.msra.mxu1 %v3037_v11  ;;  %v3054_v7 = vld [vmem:[#allocation8 + $0x290] ss:$12 sps:$4 sm:$0xff]  }
 0x1b2   : > { %v3094_v20 = vpop.eup %3093  ;;  %v1099_v22 = vpack.c.bf16 %v1089_v18, %v1084_v16  ;;  %2638 = vmatpush3.bf16.msra.mxu0 %v3040_v3  ;;  %2651 = vmatprep.subr.bf16.mxu1 %v3042_v13 }
 0x1b3   : > { %2689 = vmatprep.subr.bf16.mxu0 %v3041_v14  ;;  %v2463_v19 = vadd.f32 -1.0, %v3094_v20 }
 0x1b4   : > { %2057 = vmatmul.mubr.bf16.vlgmr.msra.gmra.mxu1 %v1099_v22 }
 0x1b5   : > { %2108 = vmatmul.mubr.bf16.vlgmr.msra.gmra.mxu0 %v3596_v5  ;;  %2652 = vmatpush3.bf16.msra.mxu1 %v3043_v23  ;;  %v1094_v28 = vsel %vm1019_vm14, %v3637_v32, %v2463_v19 }
 0x1b6   : > { %2115 = vmatprep.mubr.bf16.mxu0 %v3608_v17  ;;  %2690 = vmatpush3.bf16.msra.mxu0 %v3041_v14  ;;  %v1104_v5 = vpack.c.bf16 %v1094_v28, %v1094_v28  ;;  %v3051_v17 = vld [vmem:[#allocation8 + $0x2a8] ss:$12 sps:$4 sm:$0xff]  }
 0x1b7   : > { %2691 = vmatprep.subr.bf16.mxu0 %v3044_v24  ;;  %2653 = vmatprep.subr.bf16.mxu1 %v3045_v25 }
 0x1b8   : > { %2066 = vmatprep.mubr.bf16.mxu1 %v3283_v59 }
 0x1b9   : > { %2654 = vmatpush3.bf16.msra.mxu1 %v3046_v26 }
 0x1ba   : > { %2692 = vmatpush3.bf16.msra.mxu0 %v3044_v24  ;;  %2655 = vmatprep.subr.bf16.mxu1 %v3048_v21 }
 0x1bb   : > { %2693 = vmatprep.subr.bf16.mxu0 %v3047_v27 }
 0x1bc   : > { %2067 = vmatmul.mubr.bf16.gmra.mxu1 %v1104_v5 }
 0x1bd   : > { %2116 = vmatmul.mubr.bf16.gmra.mxu0 %v3631_v38  ;;  %2656 = vmatpush3.bf16.msra.mxu1 %v3049_v34  ;;  %v3060_v38 = vld [vmem:[#allocation8 + $0x260] ss:$12 sps:$4 sm:$0xff]  }
 0x1be   : > { %2694 = vmatpush3.bf16.msra.mxu0 %v3047_v27  ;;  %2705 = vmatprep.mubr.bf16.mxu0 %v1099_v22 }
 0x1bf   : > { %2155 = vmatprep.mubr.bf16.mxu1 %v3598_v2  ;;  %2695 = vmatprep.subr.bf16.mxu0 %v3050_v36  ;;  %v3063_v2 = vld [vmem:[#allocation8 + $0x248] ss:$12 sps:$4 sm:$0xff]  }
 0x1c0   : > { %2657 = vmatprep.subr.bf16.mxu1 %v3051_v17 }
 0x1c1   : > { %2658 = vmatpush3.bf16.msra.mxu1 %v3052_v37 }
 0x1c2   : > { %2696 = vmatpush3.bf16.msra.mxu0 %v3050_v36  ;;  %2659 = vmatprep.subr.bf16.mxu1 %v3054_v7 }
 0x1c3   : > { %2697 = vmatprep.subr.bf16.mxu0 %v3053_v39 }
 0x1c5   : > { %2660 = vmatpush3.bf16.msra.mxu1 %v3055_v4 }
 0x1c6   : > { %2698 = vmatpush3.bf16.msra.mxu0 %v3053_v39  ;;  %2661 = vmatprep.subr.bf16.mxu1 %v3057_v43 }
 0x1c7   : > { %2699 = vmatprep.subr.bf16.mxu0 %v3056_v44 }
 0x1c9   : > { %2662 = vmatpush3.bf16.msra.mxu1 %v3058_v45 }
 0x1ca   : > { %2700 = vmatpush3.bf16.msra.mxu0 %v3056_v44  ;;  %2663 = vmatprep.subr.bf16.mxu1 %v3060_v38 }
 0x1cb   : > { %2701 = vmatprep.subr.bf16.mxu0 %v3059_v46 }
 0x1cd   : > { %2664 = vmatpush3.bf16.msra.mxu1 %v3061_v49 }
 0x1ce   : > { %2702 = vmatpush3.bf16.msra.mxu0 %v3059_v46  ;;  %2665 = vmatprep.subr.bf16.mxu1 %v3063_v2 }
 0x1cf   : > { %2703 = vmatprep.subr.bf16.mxu0 %v3062_v50 }
 0x1d1   : > { %2666 = vmatpush3.bf16.msra.mxu1 %v3064_v51 }
 0x1d2   : > { %2704 = vmatpush3.bf16.msra.mxu0 %v3062_v50 }
 0x1d4   : > { %2156 = vmatmul.mubr.bf16.vlgmr.msra.gmra.mxu1 %v3600_v10 }
 0x1d5   : > { %2706 = vmatmul.mubr.bf16.vlgmr.msra.gmra.mxu0 %v1104_v5  ;;  %2163 = vmatprep.mubr.bf16.mxu1 %v3617_v15  ;;  %v1265_v15 = vld [vmem:[%s3743_s4] sm:$0x7] }
 0x1d6   : > { %v1274_v54 = vrot.slane %v1265_v15, %v420_v33  ;;  %v1278_v43 = vrot.slane %v1265_v15, %v424_v31 }
 0x1dc   : > { %2164 = vmatmul.mubr.bf16.gmra.mxu1 %v3626_v35  ;;  %v1270_v35 = vrot.slane %v1265_v15, %v416_v30 }
 0x254   : > { %v1956_v32 = vpop.f32.mrf.mxu1 }
 0x255   : > { %v2007_v52 = vpop.f32.mrf.mxu0  ;;  %v1957_v1 = vadd.f32 %v1956_v32, %v1270_v35 }
 0x256   : > { %v1958_v55 = vpop.f32.mrf.mxu1 }
 0x257   : > { %v2009_v56 = vpop.f32.mrf.mxu0  ;;  %v1959_v47 = vadd.f32 %v1958_v55, %v1274_v54  ;;  %v2008_v6 = vadd.f32 %v2007_v52, %v1957_v1 }
 0x258   : > { %v1960_v57 = vpop.f32.mrf.mxu1 }
 0x259   : > { %v2011_v58 = vpop.f32.mrf.mxu0  ;;  %v1961_v8 = vadd.f32 %v1960_v57, %v1270_v35  ;;  %v2010_v9 = vadd.f32 %v2009_v56, %v1959_v47 }
 0x25a   : > { %v1962_v59 = vpop.f32.mrf.mxu1 }
 0x25b   : > { %v2013_v60 = vpop.f32.mrf.mxu0  ;;  %v1963_v48 = vadd.f32 %v1962_v59, %v1274_v54  ;;  %v2012_v13 = vadd.f32 %v2011_v58, %v1961_v8 }
 0x25c   : > { %v1966_v61 = vpop.f32.mrf.mxu1 }
 0x25d   : > { %v2017_v40 = vpop.f32.mrf.mxu0  ;;  %v1967_v14 = vadd.f32 %v1966_v61, %v1270_v35  ;;  %v2014_v18 = vadd.f32 %v2013_v60, %v1963_v48 }
 0x25e   : > { %v1968_v62 = vpop.f32.mrf.mxu1 }
 0x25f   : > { %v2019_v53 = vpop.f32.mrf.mxu0  ;;  %v1969_v20 = vadd.f32 %v1968_v62, %v1274_v54  ;;  %v2018_v25 = vadd.f32 %v2017_v40, %v1967_v14 }
 0x260   : > { %v1970_v63 = vpop.f32.mrf.mxu1 }
 0x261   : > { %v2021_v10 = vpop.f32.mrf.mxu0  ;;  %v2020_v27 = vadd.f32 %v2019_v53, %v1969_v20 }
 0x262   : > { %v1971_v0 = vpop.f32.mrf.mxu1 }
 0x263   : > { %v2022_v41 = vpop.f32.mrf.mxu0 }
 0x274   : > { %v2058_v42 = vpop.f32.mrf.mxu1 }
 0x275   : > { %v2639_v11 = vpop.f32.mrf.mxu0  ;;  %v2059_v12 = vadd.f32 %v2058_v42, %v2008_v6 }
 0x276   : > { %v2060_v3 = vpop.f32.mrf.mxu1 }
 0x277   : > { %2219 = vst [vmem:[%s3664_s9] sm:$0xff] %v2059_v12  ;;  %v2640_v30 = vpop.f32.mrf.mxu0  ;;  %v2061_v33 = vadd.f32 %v2060_v3, %v2010_v9 }
 0x278   : > { %v2062_v16 = vpop.f32.mrf.mxu1  ;;  %v2641_v44 = vadd.f32 %v2640_v30, %v2639_v11 }
 0x279   : > { %2220 = vst [vmem:[%s3664_s9 + $0x8] sm:$0xff] %v2061_v33  ;;  %v2642_v22 = vpop.f32.mrf.mxu0  ;;  %v2063_v23 = vadd.f32 %v2062_v16, %v2012_v13 }
 0x27a   : > { %v2064_v24 = vpop.f32.mrf.mxu1  ;;  %v2110_v49 = vadd.f32 %v2641_v44, %v1278_v43 }
 0x27b   : > { %2222 = vst [vmem:[%s3664_s9 + $0x18] sm:$0xff] %v2063_v23  ;;  %v2643_v19 = vpop.f32.mrf.mxu0  ;;  %v2065_v26 = vadd.f32 %v2064_v24, %v2014_v18 }
 0x27c   : > { %v2068_v21 = vpop.f32.mrf.mxu1  ;;  %v2644_v2 = vadd.f32 %v2643_v19, %v2642_v22 }
 0x27d   : > { %2223 = vst [vmem:[%s3664_s9 + $0x20] sm:$0xff] %v2065_v26  ;;  %v2645_v28 = vpop.f32.mrf.mxu0  ;;  %v2069_v34 = vadd.f32 %v2068_v21, %v2018_v25 }
 0x27e   : > { %v2070_v5 = vpop.f32.mrf.mxu1  ;;  %v2113_v57 = vadd.f32 %v2644_v2, %v1278_v43 }
 0x27f   : > { %2225 = vst [vmem:[%s3664_s9 + $0x30] sm:$0xff] %v2069_v34  ;;  %v2646_v36 = vpop.f32.mrf.mxu0  ;;  %v2071_v17 = vadd.f32 %v2070_v5, %v2020_v27 }
 0x280   : > { %v2072_v37 = vpop.f32.mrf.mxu1  ;;  %v2647_v58 = vadd.f32 %v2646_v36, %v2645_v28 }
 0x281   : > { %2226 = vst [vmem:[%s3664_s9 + $0x38] sm:$0xff] %v2071_v17  ;;  %v2648_v7 = vpop.f32.mrf.mxu0 }
 0x282   : > { %v2073_v39 = vpop.f32.mrf.mxu1  ;;  %v2118_v62 = vadd.f32 %v2647_v58, %v1278_v43 }
 0x283   : > { %v2649_v4 = vpop.f32.mrf.mxu0 }
 0x294   : > { %v2667_v45 = vpop.f32.mrf.mxu1 }
 0x295   : > { %v2707_v38 = vpop.f32.mrf.mxu0 }
 0x296   : > { %v2668_v46 = vpop.f32.mrf.mxu1 }
 0x297   : > { %v2205_v50 = vpop.f32.mrf.mxu0  ;;  %v2669_v51 = vadd.f32 %v2668_v46, %v2667_v45 }
 0x298   : > { %v2670_v32 = vpop.f32.mrf.mxu1 }
 0x299   : > { %v2158_v52 = vadd.f32 %v2669_v51, %v2110_v49  ;;  %v2708_v55 = vpop.f32.mrf.mxu0 }
 0x29a   : > { %v2671_v56 = vpop.f32.mrf.mxu1 }
 0x29b   : > { %v2206_v59 = vadd.f32 %v2205_v50, %v2158_v52  ;;  %v2672_v29 = vadd.f32 %v2671_v56, %v2670_v32  ;;  %v2208_v61 = vpop.f32.mrf.mxu0 }
 0x29c   : > { %v2673_v31 = vpop.f32.mrf.mxu1 }
 0x29d   : > { %2221 = vst [vmem:[%s3664_s9 + $0x10] sm:$0xff] %v2206_v59  ;;  %v2161_v60 = vadd.f32 %v2672_v29, %v2113_v57 }
 0x29e   : > { %v2674_v40 = vpop.f32.mrf.mxu1 }
 0x29f   : > { %v2209_v53 = vadd.f32 %v2208_v61, %v2161_v60  ;;  %v2675_v63 = vadd.f32 %v2674_v40, %v2673_v31 }
 0x2a0   : > { %v2676_v10 = vpop.f32.mrf.mxu1 }
 0x2a1   : > { %2224 = vst [vmem:[%s3664_s9 + $0x28] sm:$0xff] %v2209_v53  ;;  %v2166_v0 = vadd.f32 %v2675_v63, %v2118_v62  ;;  %2235 = sbr.rel (!%p3757_p6) target bundleno = 706 (0x2c2), region = 60 }
 0x2a2   : > { %v2677_v41 = vpop.f32.mrf.mxu1 }
 0x2a3   : > { %v2214_v15 = vadd.f32 %v2707_v38, %v2166_v0 }
 0x2a5   : > { %2227 = vst [vmem:[%s3664_s9 + $0x40] sm:$0xff] %v2214_v15 }
 0x2a6   : > { %s3767_s11 = smov (!%p2238_p1, %s2237_s11), 3 }
 0x2a7   : > { %s3681_s28 = smul.u32 384, %s3767_s11 }
 0x2a9   : > { %s2243_s14 = ssub.s32 1152, %s3681_s28 }
 0x2aa   : > { %2244 = vsyncadd %s2229_s13, %s2243_s14  ;;  %p2586_p3 = scmp.ne.s32.totalorder %s3681_s28, 0  ;;  %s2747_s30 = smul.u32 1152, %s3338_s22 }
 0x2ab   : > { %s2250_s15 = sshll.u32 %s3664_s9, 4  ;;  %s3284_s8 = smov [#allocation10]   ;;  %s3694_s15 = int_to_ptr.vmem [resolvable:$true] %s2250_s15 }
 0x2ac   : > { %s3692_s25 = scalar_lea.hbm %s3744_s5, %s2747_s30  ;;  %s3199_s26 = scalar_lea.vmem %s3694_s15, %s3681_s28 }
 0x2ad   : > { %p3200_p11 = scmp.ne.s32.totalorder %s3694_s15, %s3199_s26  ;;  %s3203_s29 = sshll.u32 %s3284_s8, 4  ;;  %s3204_s29 = int_to_ptr.vmem [resolvable:$false] %s3203_s29 }
 0x2ae   : > { %s3205_s22 = scalar_lea.vmem %s3204_s29, 2304  ;;  %p3206_p0 = scmp.lt.s32.totalorder %s3694_s15, %s3204_s29 }
 0x2af   : > { %p3201_p7 = pnand %p3200_p11, %p2586_p3  ;;  %p3207_p2 = scmp.lt.s32.totalorder %s3205_s22, %s3199_s26 }
 0x2b1   : > { %p3202_p9 = pneg %p3201_p7  ;;  %p3208_p8 = por %p3207_p2, %p3206_p0 }
 0x2b3   : > { %p3209_p4 = pnand %p3208_p8, %p3202_p9 }
 0x2b5   : > { %3212 = shalt.err (!%p3209_p4)
}
 0x2b6   : > { %s3213_s7 = scalar_lea.hbm %s3692_s25, %s3681_s28  ;;  %s3217_s16 = scalar_lea.hbm %s3744_s5, 1920 }
 0x2b7   : > { %p3214_p12 = scmp.ne.s32.totalorder %s3692_s25, %s3213_s7  ;;  %p3218_p10 = scmp.lt.s32.totalorder %s3692_s25, %s3744_s5 }
 0x2b8   : > { %p3219_p6 = scmp.lt.s32.totalorder %s3217_s16, %s3213_s7 }
 0x2b9   : > { %p3215_p13 = pnand %p3214_p12, %p2586_p3 }
 0x2ba   : > { %p3220_p1 = por %p3219_p6, %p3218_p10 }
 0x2bb   : > { %p3216_p5 = pneg %p3215_p13 }
 0x2bd   : > { %p3221_p11 = pnand %p3220_p1, %p3216_p5 }
 0x2bf   : > { %3224 = shalt.err (!%p3221_p11)
}
 0x2c0   : > { %s3285_s30 = smov 384   ;;  %s3286_s12 = smov 24  }
 0x2c1   : > { %2256 = dma.vmem_to_hbm [thread:$0]  (%p2586_p3), %s3694_s15, %s3681_s28, %s3692_s25, %s2229_s13, %s3285_s30, %s3285_s30, %s3286_s12  }
 0x2c2 PF: > { %s2265_s17 = sand.u32 1, %s3259_s18   ;;  %p3758_p7 = scmp.ne.s32.totalorder %s3750_s6, 0 }
 0x2c3   : > { %p3759_p9 = scmp.ge.s32.totalorder %s3271_s21, 2  ;;  %s2266_s26 = scalar_lea.sflag [#allocation4], %s2265_s17 }
 0x2c5   : > { %p2738_p0 = pnand %p3759_p9, %p3758_p7 }
 0x2c7   : > { %p2739_p2 = pneg %p2738_p0 }
 0x2c9   : > { %3254 = dma.done.wait (%p2739_p2), %s2266_s26, 1152  }
 0x2ca   : > { %3256 = vsyncadd (%p2739_p2), %s2266_s26, 4294966144  ;;  %p20_p8 = scmp.ge.s32.totalorder %s3342_s24, 4   ;;  %s3760_s18 = smov %s3263_s19 }
 0x2cb   : > { %s3761_s19 = smov %s3267_s20  ;;  %s3762_s20 = smov %s3354_s27 }
 0x2cc   : > { %s3763_s21 = smov %s3342_s24  ;;  %22 = sbr.rel (!%p20_p8) target bundleno = 7 (0x7), region = 97 }
 0x2d1   :  { %2271 = vsyncpa [#allocation3], 1 }
 0x2d2   :  { %2273 = vsyncpa [#allocation3 + $0x1], 1 }
 0x2d3   :  { %2274 = vsyncpa [#allocation6], 1 }
 0x2d4   :  { %2275 = vsyncpa [#allocation9], 1 }
 0x2d5   :  { %2276 = vsyncpa [#allocation4], 1 }
 0x2d6   :  { %2278 = vsyncpa [#allocation4 + $0x1], 1 }

</bundles_post_ra>
